<compile_context>
chip_gen: v5e
topology: v5e:2x2
jax: 0.10.0
libtpu: 0.0.40
codegen_flags: <defaults>
</compile_context>

<pallas_src>
import functools
import math

import jax
import jax.numpy as jnp
from jax.experimental import pallas as pl
from jax.experimental.pallas import tpu as pltpu


# ----------------------------------------------------------------------------
# helpers
# ----------------------------------------------------------------------------

def _round_up(x, m):
    return (x + m - 1) // m * m


def _acc_dtype(dtype):
    """Value-preserving accumulator dtype for the one-hot fallback."""
    dtype = jnp.dtype(dtype)
    if dtype.itemsize >= 4:
        return dtype
    if jnp.issubdtype(dtype, jnp.floating):
        return jnp.float32      # exact superset of bf16/f16; safe on v5e (no bf16 VPU)
    return jnp.int32


@functools.lru_cache(maxsize=None)
def _vmem_limit_bytes():
    """Scoped-VMEM limit to request: ~3/4 of physical, capped at 96 MiB."""
    cap = 64 * 1024 * 1024                     # conservative default (v7x physical)
    try:
        info = pltpu.get_tpu_info()
        cap = int(getattr(info, "vmem_capacity_bytes", cap))
    except Exception:
        pass
    return int(min((cap * 3) // 4, 96 * 1024 * 1024))


def _choose_row_tile(n_rows, d_pad, k_pad, data_bytes, vmem_limit):
    """Largest row tile that (double-buffered) fits comfortably in VMEM."""
    per_row = 2 * (d_pad * data_bytes + k_pad * 4 + k_pad * data_bytes)
    tm = max(8, (vmem_limit // 2) // max(per_row, 1))
    tm = min(tm, 512)                                        # diminishing returns past ~512 rows
    tm = min(tm, _round_up(n_rows, 8))                       # not bigger than the problem
    tm = min(tm, max(8, _round_up(pl.cdiv(n_rows, 2), 8)))   # keep >=2 grid steps (megacore)
    return max(8, (tm // 8) * 8)


# ----------------------------------------------------------------------------
# kernels
# ----------------------------------------------------------------------------

def _gather_native_kernel(data_ref, idx_ref, out_ref):
    # data_ref: (TM, Dp), idx_ref/out_ref: (TM, Kp).  Last-dim dynamic gather;
    # lowers to Mosaic's dynamic gather where supported (probed at call time).
    out_ref[...] = jnp.take_along_axis(data_ref[...], idx_ref[...], axis=-1)


def _gather_onehot_kernel(data_ref, idx_ref, out_ref, acc_ref):
    # Portable fallback.  Blocks: data (8, 128) D-chunk, idx/out (8, 128) K-chunk.
    # acc_ref persists across the innermost ("arbitrary") D-chunk grid axis.
    d_step = pl.program_id(2)

    @pl.when(d_step == 0)
    def _init():
        acc_ref[...] = jnp.zeros_like(acc_ref)

    dc = data_ref.shape[-1]
    idx = idx_ref[...]                                            # (8, 128) int32
    data = data_ref[...]                                          # (8, 128)
    # iota over the lanes of this D-chunk, offset to global column indices
    lane = jax.lax.broadcasted_iota(jnp.int32, (1, 1, dc), 2) + d_step * dc
    mask = idx[:, :, None] == lane                                # (8, 128, 128) bool
    vals = jnp.where(mask,
                     data[:, None, :].astype(acc_ref.dtype),
                     jnp.zeros((), acc_ref.dtype))                # bounded chunk, no (TM,K,D)
    acc_ref[...] += jnp.sum(vals, axis=-1)                        # exact: one nonzero per (m,k)
    out_ref[...] = acc_ref[...].astype(out_ref.dtype)


# ----------------------------------------------------------------------------
# pallas_call builders
# ----------------------------------------------------------------------------

def _make_native_call(tm, d_pad, k_pad, dtype, n_row_tiles, vmem_limit):
    return pl.pallas_call(
        _gather_native_kernel,
        out_shape=jax.ShapeDtypeStruct((n_row_tiles * tm, k_pad), dtype),
        grid=(n_row_tiles,),
        in_specs=[
            pl.BlockSpec((tm, d_pad), lambda i: (i, 0)),
            pl.BlockSpec((tm, k_pad), lambda i: (i, 0)),
        ],
        out_specs=pl.BlockSpec((tm, k_pad), lambda i: (i, 0)),
        compiler_params=pltpu.CompilerParams(
            dimension_semantics=("parallel",),
            vmem_limit_bytes=int(vmem_limit)),
    )


_FB_ROWS, _FB_K, _FB_D = 8, 128, 128   # fallback block sizes (bounded intermediate)


def _make_onehot_call(r_pad, d_pad, k_pad, dtype, vmem_limit):
    grid = (r_pad // _FB_ROWS, k_pad // _FB_K, d_pad // _FB_D)
    return pl.pallas_call(
        _gather_onehot_kernel,
        out_shape=jax.ShapeDtypeStruct((r_pad, k_pad), dtype),
        grid=grid,
        in_specs=[
            pl.BlockSpec((_FB_ROWS, _FB_D), lambda i, k, d: (i, d)),
            pl.BlockSpec((_FB_ROWS, _FB_K), lambda i, k, d: (i, k)),
        ],
        out_specs=pl.BlockSpec((_FB_ROWS, _FB_K), lambda i, k, d: (i, k)),
        scratch_shapes=[pltpu.VMEM((_FB_ROWS, _FB_K), _acc_dtype(dtype))],
        compiler_params=pltpu.CompilerParams(
            dimension_semantics=("parallel", "parallel", "arbitrary"),
            vmem_limit_bytes=int(vmem_limit)),
    )


@functools.lru_cache(maxsize=None)
def _native_gather_supported(tm, d_pad, k_pad, dtype_name, vmem_limit):
    """Probe: compile AND numerically verify one native-gather block.

    Any failure (lowering, compile, runtime, mismatch) -> use the one-hot path.
    """
    dtype = jnp.dtype(dtype_name)
    try:
        call = _make_native_call(tm, d_pad, k_pad, dtype, 1, vmem_limit)
        kd, ki = jax.random.split(jax.random.PRNGKey(1234))
        if jnp.issubdtype(dtype, jnp.floating):
            probe_data = jax.random.normal(kd, (tm, d_pad), dtype=jnp.float32).astype(dtype)
        else:
            probe_data = jax.random.randint(kd, (tm, d_pad), 0, 128,
                                            dtype=jnp.int32).astype(dtype)
        probe_idx = jax.random.randint(ki, (tm, k_pad), 0, d_pad, dtype=jnp.int32)
        got = jax.block_until_ready(call(probe_data, probe_idx))
        want = jnp.take_along_axis(probe_data, probe_idx, axis=-1)
        return bool(jnp.array_equal(got, want))
    except Exception:
        return False


# ----------------------------------------------------------------------------
# public wrapper
# ----------------------------------------------------------------------------

_MIN_PALLAS_WORK = 1 << 15   # below R*(D+K) of this, plain XLA gather is faster


def fast_gather_last_dim(data, idx, *, min_pallas_work=_MIN_PALLAS_WORK):
    """Pallas TPU equivalent of FastGatherLastDim.forward: torch.gather(data, -1, idx).

    Out-of-range indices are clamped to [0, D-1] (torch.gather would raise).
    """
    if data.shape[:-1] != idx.shape[:-1]:
        raise ValueError("data and idx must share all leading dimensions")
    lead = data.shape[:-1]
    D = data.shape[-1]
    K = idx.shape[-1]
    R = math.prod(lead) if lead else 1

    idx = jnp.clip(idx.astype(jnp.int32), 0, D - 1)

    # Tiny problems: kernel launch + pipeline setup dominates; use XLA's gather.
    if R * (D + K) <= min_pallas_work:
        return jnp.take_along_axis(data, idx, axis=-1)

    data2 = data.reshape(R, D)
    idx2 = idx.reshape(R, K)

    # Lane-dense padding of last dims (multiples of 128) and of rows (multiple
    # of the row tile) so blocks always satisfy the (8, 128) constraint.
    d_pad = _round_up(D, 128)
    k_pad = _round_up(K, 128)
    vmem_limit = _vmem_limit_bytes()
    data_bytes = jnp.dtype(data.dtype).itemsize
    tm = _choose_row_tile(R, d_pad, k_pad, data_bytes, vmem_limit)
    r_pad = _round_up(R, tm)

    if (r_pad, d_pad) != (R, D):
        data2 = jnp.pad(data2, ((0, r_pad - R), (0, d_pad - D)))
    if (r_pad, k_pad) != (R, K):
        idx2 = jnp.pad(idx2, ((0, r_pad - R), (0, k_pad - K)))

    dtype = jnp.dtype(data.dtype)
    if _native_gather_supported(tm, d_pad, k_pad, dtype.name, vmem_limit):
        out = _make_native_call(tm, d_pad, k_pad, dtype, r_pad // tm, vmem_limit)(data2, idx2)
    else:
        out = _make_onehot_call(r_pad, d_pad, k_pad, dtype, vmem_limit)(data2, idx2)

    return out[:R, :K].reshape(*lead, K)


# ----------------------------------------------------------------------------
# demo / self-check
# ----------------------------------------------------------------------------

if __name__ == "__main__":
    key = jax.random.PRNGKey(0)
    k1, k2, k3, k4 = jax.random.split(key, 4)

    # Case 1: tiny DeBERTa-like shapes -> wrapper dispatches to XLA's gather.
    B, S, D, K = 2, 8, 32, 8
    data_s = jax.random.normal(k1, (B, S, D), dtype=jnp.float32)
    idx_s = jax.random.randint(k2, (B, S, K), 0, D, dtype=jnp.int32)
    out_s = jax.block_until_ready(fast_gather_last_dim(data_s, idx_s))
    ref_s = jnp.take_along_axis(data_s, idx_s, axis=-1)
    assert out_s.shape == ref_s.shape and out_s.dtype == ref_s.dtype
    assert jnp.array_equal(out_s, ref_s), "small-case mismatch vs reference"

    # Case 2: larger (still small) shapes with non-128-multiple D/K -> Pallas path
    # (exercises row/lane padding, multi-step grid, native-gather probe + fallback).
    B, S, D, K = 2, 64, 200, 100
    data_l = jax.random.normal(k3, (B, S, D), dtype=jnp.float32)
    idx_l = jax.random.randint(k4, (B, S, K), 0, D, dtype=jnp.int32)
    out_l = jax.block_until_ready(fast_gather_last_dim(data_l, idx_l))
    ref_l = jnp.take_along_axis(data_l, idx_l, axis=-1)
    assert out_l.shape == ref_l.shape and out_l.dtype == ref_l.dtype
    assert jnp.array_equal(out_l, ref_l), "Pallas gather mismatch vs reference"

    print("KERNEL_OK")
</pallas_src>

<mosaic_0001>
module attributes {stable_mosaic.version = 11 : i64} {
  func.func @_gather_native_kernel(%arg0: i32, %arg1: memref<64x256xf32, #tpu.memory_space<vmem>>, %arg2: memref<64x128xi32, #tpu.memory_space<vmem>>, %arg3: memref<64x128xf32, #tpu.memory_space<vmem>>) attributes {dimension_semantics = [#tpu.dimension_semantics<parallel>], iteration_bounds = array<i64: 1>, scalar_prefetch = 0 : i64, scratch_operands = 0 : i64, tpu.core_type = #tpu.core_type<tc>, window_params = [{transform_indices = @transform_0, window_bounds = array<i64: 64, 256>}, {transform_indices = @transform_1, window_bounds = array<i64: 64, 128>}, {transform_indices = @transform_2, window_bounds = array<i64: 64, 128>}]} {
    %c0 = arith.constant 0 : index
    %c0_0 = arith.constant 0 : index
    %0 = vector.load %arg1[%c0, %c0_0] : memref<64x256xf32, #tpu.memory_space<vmem>>, vector<64x256xf32>
    %c0_1 = arith.constant 0 : index
    %c0_2 = arith.constant 0 : index
    %1 = vector.load %arg2[%c0_1, %c0_2] : memref<64x128xi32, #tpu.memory_space<vmem>>, vector<64x128xi32>
    %c0_i32 = arith.constant 0 : i32
    %2 = vector.broadcast %c0_i32 : i32 to vector<64x128xi32>
    %3 = arith.cmpi slt, %1, %2 : vector<64x128xi32>
    %c256_i32 = arith.constant 256 : i32
    %4 = vector.broadcast %c256_i32 : i32 to vector<64x128xi32>
    %5 = arith.addi %1, %4 : vector<64x128xi32>
    %6 = arith.select %3, %5, %1 : vector<64x128xi1>, vector<64x128xi32>
    %7 = vector.shape_cast %6 : vector<64x128xi32> to vector<64x128x1xi32>
    %8 = vector.shape_cast %7 : vector<64x128x1xi32> to vector<64x128xi32>
    %9 = tpu.dynamic_gather %0[%8] in [1] : vector<64x256xf32>, vector<64x128xi32> -> vector<64x128xf32>
    %c0_3 = arith.constant 0 : index
    %c0_4 = arith.constant 0 : index
    %10 = vector.load %arg3[%c0_3, %c0_4] : memref<64x128xf32, #tpu.memory_space<vmem>>, vector<64x128xf32>
    tpu.vector_store %arg3[%c0_3, %c0_4], %9 {strides = array<i32>} : memref<64x128xf32, #tpu.memory_space<vmem>>, vector<64x128xf32>,
    return
  }
  func.func @transform_0(%arg0: i32) -> (i32, i32) {
    %c0_i32 = arith.constant 0 : i32
    %c0_i32_0 = arith.constant 0 : i32
    return %arg0, %c0_i32 : i32, i32
  }
  func.func @transform_1(%arg0: i32) -> (i32, i32) {
    %c0_i32 = arith.constant 0 : i32
    %c0_i32_0 = arith.constant 0 : i32
    return %arg0, %c0_i32 : i32, i32
  }
  func.func @transform_2(%arg0: i32) -> (i32, i32) {
    %c0_i32 = arith.constant 0 : i32
    %c0_i32_0 = arith.constant 0 : i32
    return %arg0, %c0_i32 : i32, i32
  }
}

module attributes {stable_mosaic.version = 11 : i64} {
  func.func @_gather_onehot_kernel(%arg0: i32, %arg1: i32, %arg2: i32, %arg3: memref<8x128xf32, #tpu.memory_space<vmem>>, %arg4: memref<8x128xi32, #tpu.memory_space<vmem>>, %arg5: memref<8x128xf32, #tpu.memory_space<vmem>>, %arg6: memref<8x128xf32, #tpu.memory_space<vmem>>) attributes {dimension_semantics = [#tpu.dimension_semantics<parallel>, #tpu.dimension_semantics<parallel>, #tpu.dimension_semantics<arbitrary>], iteration_bounds = array<i64: 16, 1, 2>, scalar_prefetch = 0 : i64, scratch_operands = 1 : i64, tpu.core_type = #tpu.core_type<tc>, window_params = [{transform_indices = @transform_0, window_bounds = array<i64: 8, 128>}, {transform_indices = @transform_1, window_bounds = array<i64: 8, 128>}, {transform_indices = @transform_2, window_bounds = array<i64: 8, 128>}]} {
    %c0_i32 = arith.constant 0 : i32
    %0 = arith.cmpi eq, %arg2, %c0_i32 : i32
    %1 = arith.extui %0 : i1 to i32
    %c0_i32_0 = arith.constant 0 : i32
    %2 = arith.cmpi ne, %1, %c0_i32_0 : i32
    scf.if %2 {
      %cst_13 = arith.constant 0.000000e+00 : f32
      %24 = vector.broadcast %cst_13 : f32 to vector<8x128xf32>
      %c0_14 = arith.constant 0 : index
      %c0_15 = arith.constant 0 : index
      %25 = vector.load %arg6[%c0_14, %c0_15] : memref<8x128xf32, #tpu.memory_space<vmem>>, vector<8x128xf32>
      tpu.vector_store %arg6[%c0_14, %c0_15], %24 {strides = array<i32>} : memref<8x128xf32, #tpu.memory_space<vmem>>, vector<8x128xf32>,
    } else {
    }
    %c0 = arith.constant 0 : index
    %c0_1 = arith.constant 0 : index
    %3 = vector.load %arg4[%c0, %c0_1] : memref<8x128xi32, #tpu.memory_space<vmem>>, vector<8x128xi32>
    %c0_2 = arith.constant 0 : index
    %c0_3 = arith.constant 0 : index
    %4 = vector.load %arg3[%c0_2, %c0_3] : memref<8x128xf32, #tpu.memory_space<vmem>>, vector<8x128xf32>
    %5 = tpu.iota {dimensions = array<i32: 2>} : vector<1x1x128xi32>
    %c128_i32 = arith.constant 128 : i32
    %6 = arith.muli %arg2, %c128_i32 : i32
    %7 = vector.broadcast %6 : i32 to vector<1x1x128xi32>
    %8 = arith.addi %5, %7 : vector<1x1x128xi32>
    %9 = vector.shape_cast %3 : vector<8x128xi32> to vector<8x128x1xi32>
    %10 = vector.broadcast %9 : vector<8x128x1xi32> to vector<8x128x128xi32>
    %11 = vector.broadcast %8 : vector<1x1x128xi32> to vector<8x128x128xi32>
    %12 = arith.cmpi eq, %10, %11 : vector<8x128x128xi32>
    %13 = vector.shape_cast %4 : vector<8x128xf32> to vector<8x1x128xf32>
    %cst = arith.constant 0.000000e+00 : f32
    %14 = vector.shape_cast %13 : vector<8x1x128xf32> to vector<8x1x128xf32>
    %15 = vector.broadcast %14 : vector<8x1x128xf32> to vector<8x128x128xf32>
    %16 = vector.broadcast %cst : f32 to vector<8x128x128xf32>
    %17 = arith.select %12, %15, %16 : vector<8x128x128xi1>, vector<8x128x128xf32>
    %c0_4 = arith.constant 0 : index
    %c0_5 = arith.constant 0 : index
    %18 = vector.load %arg6[%c0_4, %c0_5] : memref<8x128xf32, #tpu.memory_space<vmem>>, vector<8x128xf32>
    %cst_6 = arith.constant dense<0.000000e+00> : vector<8x128xf32>
    %19 = vector.multi_reduction <add>, %17, %cst_6 [2] : vector<8x128x128xf32> to vector<8x128xf32>
    %20 = arith.addf %18, %19 : vector<8x128xf32>
    %c0_7 = arith.constant 0 : index
    %c0_8 = arith.constant 0 : index
    %21 = vector.load %arg6[%c0_7, %c0_8] : memref<8x128xf32, #tpu.memory_space<vmem>>, vector<8x128xf32>
    tpu.vector_store %arg6[%c0_7, %c0_8], %20 {strides = array<i32>} : memref<8x128xf32, #tpu.memory_space<vmem>>, vector<8x128xf32>,
    %c0_9 = arith.constant 0 : index
    %c0_10 = arith.constant 0 : index
    %22 = vector.load %arg6[%c0_9, %c0_10] : memref<8x128xf32, #tpu.memory_space<vmem>>, vector<8x128xf32>
    %c0_11 = arith.constant 0 : index
    %c0_12 = arith.constant 0 : index
    %23 = vector.load %arg5[%c0_11, %c0_12] : memref<8x128xf32, #tpu.memory_space<vmem>>, vector<8x128xf32>
    tpu.vector_store %arg5[%c0_11, %c0_12], %22 {strides = array<i32>} : memref<8x128xf32, #tpu.memory_space<vmem>>, vector<8x128xf32>,
    return
  }
  func.func @transform_0(%arg0: i32, %arg1: i32, %arg2: i32) -> (i32, i32) {
    %c0_i32 = arith.constant 0 : i32
    return %arg0, %arg2 : i32, i32
  }
  func.func @transform_1(%arg0: i32, %arg1: i32, %arg2: i32) -> (i32, i32) {
    %c0_i32 = arith.constant 0 : i32
    return %arg0, %arg1 : i32, i32
  }
  func.func @transform_2(%arg0: i32, %arg1: i32, %arg2: i32) -> (i32, i32) {
    %c0_i32 = arith.constant 0 : i32
    return %arg0, %arg1 : i32, i32
  }
}

</mosaic_0001>

<bundles_post_ra>
// kernel: tpu_custom_call.1
= control target key start
LH: loop header
LB: loop body
LE: loop exit
PB: predicated region body
PF: predicated region fallthrough
CT: control target
= control target key end

     0   :  { %s4010_s0 = inlined_call_operand.hbm [shape: f32[128,256], index: 0, kind: input, shape index: {}]   ;;  %s4011_s1 = inlined_call_operand.hbm [shape: s32[128,128], index: 1, kind: input, shape index: {}]   ;;  %s4012_s2 = inlined_call_operand.hbm [shape: f32[128,128], index: 2, kind: output, shape index: {}]  }
   0x1   :  { %4023 = sst [smem:[#allocation49_spill]] %s4010_s0 }
   0x2   :  { %7 = vsyncpa [#allocation4], 0 }
   0x3   :  { %9 = vsyncpa [#allocation4 + $0x1], 0 }
   0x4   :  { %10 = vsyncpa [#allocation7], 0 }
   0x5   :  { %12 = vsyncpa [#allocation7 + $0x1], 0 }
   0x6   :  { %13 = vsyncpa [#allocation5], 0 }
   0x7   :  { %15 = vsyncpa [#allocation5 + $0x1], 0  ;;  %s2556_s9 = smov 0   ;;  %s2558_s10 = smov 0  }
   0x8   :  { %s2560_s11 = smov 0   ;;  %s2562_s12 = smov 0  }
   0x9   :  { %s2564_s13 = smov 0   ;;  %s2566_s14 = smov 0  }
   0xa   :  { %s2568_s15 = smov 0   ;;  %s2570_s16 = smov 0  }
   0xb   :  { %s2572_s17 = smov 0   ;;  %s2574_s18 = smov 0  }
   0xc   :  { %s2576_s19 = smov 0  }
   0xd LB: > { %s4013_s20 = sadd.s32 4294967295, %s2538_s19   ;;  %s33_s21 = sadd.s32 1, %s2530_s17  ;;  %s2538_s19 = sphi %s2576_s19, %s21_s19   ;;  %s2534_s18 = sphi %s2574_s18, %s4149_s18   ;;  %s2530_s17 = sphi %s2572_s17, %s4148_s17   ;;  %s2526_s16 = sphi %s2570_s16, %s4147_s16   ;;  %s2522_s15 = sphi %s2568_s15, %s4146_s15   ;;  %s2518_s14 = sphi %s2566_s14, %s4145_s14   ;;  %s2514_s13 = sphi %s2564_s13, %s4144_s13   ;;  %s2510_s12 = sphi %s2562_s12, %s4143_s12   ;;  %s2506_s11 = sphi %s2560_s11, %s4142_s11   ;;  %s2502_s10 = sphi %s2558_s10, %s4141_s10   ;;  %s2498_s9 = sphi %s2556_s9, %s4140_s9  }
   0xe   : > { %p34_p0 = scmp.ge.s32.totalorder %s33_s21, 2  ;;  %s40_s22 = sadd.s32 1, %s2534_s18 }
   0xf   : > { %s49_s23 = sadd.s32 1, %s2518_s14  ;;  %p56_p1 = scmp.ne.s32.totalorder %s2518_s14, %s2514_s13 }
  0x10   : > { %s4151_s21 = smov (%p34_p0, %s33_s21), 0  ;;  %s4153_s22 = smov (!%p34_p0, %s40_s22), %s2534_s18 }
  0x11   : > { %4024 = sst [smem:[#allocation12_spill]] %s4151_s21  ;;  %s45_s24 = ssub.s32 %s2530_s17, %s4151_s21 }
  0x12   : > { %p57_p2 = scmp.eq.s32.totalorder %s2538_s19, 0  ;;  %p42_p3 = scmp.ge.s32.totalorder %s4153_s22, 16 }
  0x13   : > { %p62_p4 = scmp.ne.s32.totalorder %s2514_s13, %s2510_s12  ;;  %p2630_p6 = scmp.eq.s32.totalorder %s4013_s20, 0 }
  0x14   : > { %p2624_p5 = por %p57_p2, %p56_p1  ;;  %s4155_s22 = smov (%p42_p3, %s4153_s22), 0 }
  0x15   : > { %4027 = sst [smem:[#allocation13_spill]] %s4155_s22  ;;  %p2638_p7 = por %p2630_p6, %p62_p4 }
  0x16   : > { %s44_s28 = ssub.s32 %s2534_s18, %s4155_s22  ;;  %p2142_p8 = scmp.lt.s32.totalorder %s2538_s19, 32 }
  0x17   : > { %s46_s29 = sor.u32 %s45_s24, %s44_s28  ;;  %p75_p9 = scmp.eq.s32.totalorder %s44_s28, 0 }
  0x18   : > { %p47_p10 = scmp.eq.s32.totalorder %s46_s29, 0  ;;  %s142_s30 = sand.u32 1, %s2518_s14  }
  0x19   : > { %s2110_s3 = sshll.u32 %s142_s30, 3  ;;  %s2111_s5 = sshll.u32 %s2534_s18, 1 }
  0x1a   : > { %s2647_s4 = scalar_select %p47_p10, %s2518_s14, %s49_s23  }
  0x1b   : > { %s150_s6 = sadd.s32 %s2530_s17, %s2111_s5  ;;  %s146_s7 = scalar_lea.vmem [#allocation3], %s2110_s3 }
  0x1c   : > { %s156_s8 = sshll.u32 %s146_s7, 4  ;;  %s2112_s12 = sshll.u32 %s150_s6, 3  ;;  %s157_s8 = int_to_ptr.vmem [resolvable:$true] %s156_s8 }
  0x1d   : > { %s4029_s0 = sld [smem:[#allocation49_spill]]  ;;  %p2132_p11 = pnand %p2142_p8, %p2624_p5 }
  0x1e   : > { %p2115_p12 = scmp.ge.s32.totalorder %s2538_s19, 1  ;;  %s143_s3 = scalar_lea.sflag [#allocation4], %s142_s30 }
  0x1f   : > { %p181_p13 = scmp.lt.s32.totalorder %s2538_s19, 33  ;;  %s2107_s6 = sadd.s32 4294967294, %s2538_s19  }
  0x20   : > { %s77_s7 = sadd.s32 1, %s2506_s11  ;;  %p84_p1 = scmp.ne.s32.totalorder %s2506_s11, %s2502_s10 }
  0x21   : > { %p2660_p0 = pnand %p2115_p12, %p181_p13  ;;  %p90_p3 = scmp.ne.s32.totalorder %s2502_s10, %s2498_s9 }
  0x22   : > { %s2668_s25 = scalar_select %p75_p9, %s2506_s11, %s77_s7  }
  0x23   : > { %s152_s20 = scalar_lea.hbm %s4029_s0, %s2112_s12  ;;  %p122_p5 = scmp.eq.s32.totalorder %s2107_s6, 31 }
  0x24   : > { %s154_s23 = sshll.u32 %s152_s20, 4  ;;  %s4031_s20 = sadd.s32 4294967295, %s2538_s19   ;;  %s155_s23 = int_to_ptr.hbm [resolvable:$true] %s154_s23 }
  0x25   : > { %2134 = dma.hbm_to_vmem [thread:$0]  (!%p2132_p11), %s155_s23, 128, %s157_s8, %s143_s3  }
  0x26   : > { %p116_p4 = scmp.eq.s32.totalorder %s4031_s20, 31  ;;  %p2678_p10 = por %p90_p3, %p2630_p6 }
  0x27   : > { %p2686_p12 = por %p122_p5, %p90_p3  ;;  %s163_s28 = sand.u32 1, %s2506_s11  }
  0x28   : > { %p2682_p11 = por %p116_p4, %p84_p1  ;;  %s2114_s24 = sshll.u32 %s2534_s18, 3 }
  0x29   : > { %p86_p9 = por %p84_p1, %p57_p2  ;;  %s2113_s29 = sshll.u32 %s163_s28, 3 }
  0x2a   : > { %s172_s26 = scalar_lea.hbm %s4011_s1, %s2114_s24  ;;  %s167_s7 = scalar_lea.vmem [#allocation6], %s2113_s29 }
  0x2b   : > { %s174_s6 = sshll.u32 %s172_s26, 4  ;;  %s176_s20 = sshll.u32 %s167_s7, 4  ;;  %s175_s6 = int_to_ptr.hbm [resolvable:$true] %s174_s6  ;;  %s177_s20 = int_to_ptr.vmem [resolvable:$true] %s176_s20 }
  0x2c   : > { %p2135_p6 = pnand %p2142_p8, %p86_p9  ;;  %s164_s0 = scalar_lea.sflag [#allocation7], %s163_s28 }
  0x2d   : > { %185 = sbr.rel (%p2660_p0) target bundleno = 1385 (0x569), region = 28 }
  0x2e   : > { %2137 = dma.hbm_to_vmem [thread:$0]  (!%p2135_p6), %s175_s6, 128, %s177_s20, %s164_s0  }
  0x32   : > { %s187_s22 = sand.u32 1, %s2514_s13  }
  0x33   : > { %s2702_s21 = sshll.u32 %s187_s22, 3  ;;  %s188_s23 = scalar_lea.sflag [#allocation4], %s187_s22 }
  0x34   : > { %s191_s24 = scalar_lea.vmem [#allocation3], %s2702_s21 }
  0x35   : > { %2485 = dma.done.wait (%p2638_p7), %s188_s23, 128  }
  0x36   : > { %2487 = vsyncadd (%p2638_p7), %s188_s23, 4294967168  ;;  %s2710_s28 = sand.u32 1, %s2502_s10  }
  0x37   : > { %s2117_s0 = sshll.u32 %s2710_s28, 3  ;;  %s198_s5 = scalar_lea.sflag [#allocation7], %s2710_s28 }
  0x38   : > { %s201_s29 = scalar_lea.vmem [#allocation6], %s2117_s0 }
  0x39   : > { %2489 = dma.done.wait (%p2678_p10), %s198_s5, 128  }
  0x3a   : > { %2491 = vsyncadd (%p2678_p10), %s198_s5, 4294967168  ;;  %s2718_s22 = scalar_lea.vmem [#allocation8], %s2117_s0  ;;  %p2119_p2 = scmp.ne.s32.totalorder %s2522_s15, 0 }
  0x3c   : > { %231 = sbr.rel (%p2119_p2) target bundleno = 67 (0x43), region = 40 }
  0x41   : > { %v2540_v0 = vmov 0.0  }
  0x42   : > { %232 = vst [vmem:[#allocation2] sm:$0xff] %v2540_v0 }
  0x43 PF: > { %v235_v1 = vlaneseq  ;;  %v2731_v5 = vld [vmem:[%s201_s29] sm:$0xff]  ;;  %s2120_s27 = sshll.u32 %s2522_s15, 7  ;;  %v2939_v52 = vld [vmem:[%s191_s24] sm:$0xff]  ;;  %s2122_s15 = sshll.u32 %s2526_s16, 3 }
  0x44   : > { %v2736_v6 = vperm.slane %v2731_v5, 0  ;;  %v2742_v7 = vperm.slane %v2731_v5, 3  ;;  %v2796_v17 = vperm.slane %v2731_v5, 4  ;;  %v337_v20 = vperm.slane %v2731_v5, 1  ;;  %s1990_s3 = scalar_lea.hbm %s4012_s2, %s2122_s15  ;;  %s1992_s16 = sshll.u32 %s2718_s22, 4  ;;  %s1993_s16 = int_to_ptr.vmem [resolvable:$true] %s1992_s16 }
  0x45   : > { %v2722_v2 = vshrl.u32 %v235_v1, 7  ;;  %v2820_v21 = vperm.slane %v2731_v5, 5  ;;  %v2847_v24 = vperm.slane %v2731_v5, 6  ;;  %v434_v25 = vperm.slane %v2731_v5, 2  ;;  %s1994_s26 = sshll.u32 %s1990_s3, 4  ;;  %s1979_s6 = scalar_lea.sflag [#allocation5], %s2710_s28  ;;  %s1995_s26 = int_to_ptr.hbm [resolvable:$true] %s1994_s26 }
  0x46   : > { %v2876_v30 = vperm.slane %v2731_v5, 7  ;;  %v2928_v48 = vand.u32 127, %v235_v1  ;;  %v238_v49 = vstv %s2120_s27  ;;  %v2946_v54 = vperm.slane %v2939_v52, 0  ;;  %s2426_s7 = sshra.s32 %s1995_s26, 4  ;;  %s2432_s0 = scalar_lea.hbm %s4012_s2, 128  ;;  %s2427_s7 = int_to_ptr.hbm [resolvable:$true] %s2426_s7 }
  0x47   : > { %2233 = vset.pattern.permute.xlu0 %v2722_v2  ;;  %v2726_v3 = vadd.s32 32, %v2722_v2  ;;  %v2729_v4 = vadd.s32 16, %v2722_v2  ;;  %v2745_v8 = vadd.s32 40, %v2722_v2  ;;  %v2748_v9 = vadd.s32 24, %v2722_v2  ;;  %s2428_s20 = scalar_lea.hbm %s2427_s7, 8  ;;  %p2433_p0 = scmp.lt.s32.totalorder %s2427_s7, %s4012_s2 }
  0x48   : > { %v2757_v10 = vadd.s32 56, %v2722_v2  ;;  %v2760_v11 = vadd.s32 48, %v2722_v2  ;;  %v2766_v12 = vadd.s32 80, %v2722_v2  ;;  %v2772_v13 = vadd.s32 72, %v2722_v2  ;;  %4042 = vst [vmem:[#allocation21_spill] sm:$0xff] %v2928_v48  ;;  %p2429_p7 = scmp.ne.s32.totalorder %s2427_s7, %s2428_s20  ;;  %p2434_p1 = scmp.lt.s32.totalorder %s2432_s0, %s2428_s20 }
  0x49   : > { %2236 = vset.pattern.permute.xlu2 %v2726_v3  ;;  %2234 = vset.pattern.permute.xlu1 %v2729_v4  ;;  %v2778_v14 = vadd.s32 120, %v2722_v2  ;;  %v2784_v15 = vadd.s32 96, %v2722_v2  ;;  %v2787_v16 = vadd.s32 88, %v2722_v2  ;;  %v2799_v18 = vadd.s32 112, %v2722_v2 }
  0x4a   : > { %v2808_v19 = vadd.s32 8, %v2722_v2  ;;  %v2826_v22 = vadd.s32 64, %v2722_v2  ;;  %v2834_v23 = vadd.s32 104, %v2722_v2  ;;  %v2933_v50 = vadd.s32 %v238_v49, %v2928_v48  ;;  %p2430_p8 = pnand %p2429_p7, %p2682_p11  ;;  %p2435_p3 = por %p2434_p1, %p2433_p0 }
  0x4c   : > { %p2431_p13 = pneg %p2430_p8 }
  0x4e   : > { %p2436_p4 = pnand %p2435_p3, %p2431_p13 }
  0x4f   : > { %245 = vperm.xlu0 %2233, %v2736_v6  }
  0x51   : > { %269 = vperm.xlu2 %2236, %v2736_v6   ;;  %257 = vperm.xlu1 %2234, %v2736_v6  }
  0x57   : > { %536 = vperm.xlu0 %2233, %v2742_v7  }
  0x59   : > { %2237 = vset.pattern.permute.xlu2 %v2745_v8  ;;  %2235 = vset.pattern.permute.xlu1 %v2748_v9 }
  0x5f   : > { %2276 = vset.pattern.permute.xlu0 %v2745_v8 }
  0x61   : > { %275 = vperm.xlu2 %2237, %v2736_v6   ;;  %263 = vperm.xlu1 %2235, %v2736_v6  }
  0x67   : > { %566 = vperm.xlu0 %2276, %v2742_v7  }
  0x69   : > { %2239 = vset.pattern.permute.xlu2 %v2757_v10  ;;  %2238 = vset.pattern.permute.xlu1 %v2760_v11 }
  0x6f   : > { %2281 = vset.pattern.permute.xlu0 %v2766_v12 }
  0x71   : > { %287 = vperm.xlu2 %2239, %v2736_v6   ;;  %281 = vperm.xlu1 %2238, %v2736_v6  }
  0x77   : > { %596 = vperm.xlu0 %2281, %v2742_v7  }
  0x79   : > { %2241 = vset.pattern.permute.xlu2 %v2766_v12  ;;  %2240 = vset.pattern.permute.xlu1 %v2772_v13 }
  0x7f   : > { %2286 = vset.pattern.permute.xlu0 %v2778_v14 }
  0x81   : > { %305 = vperm.xlu2 %2241, %v2736_v6   ;;  %299 = vperm.xlu1 %2240, %v2736_v6  }
  0x87   : > { %626 = vperm.xlu0 %2286, %v2742_v7  }
  0x89   : > { %2243 = vset.pattern.permute.xlu2 %v2784_v15  ;;  %2242 = vset.pattern.permute.xlu1 %v2787_v16 }
  0x8f   : > { %2291 = vset.pattern.permute.xlu0 %v2726_v3 }
  0x91   : > { %317 = vperm.xlu2 %2243, %v2736_v6   ;;  %311 = vperm.xlu1 %2242, %v2736_v6  }
  0x97   : > { %657 = vperm.xlu0 %2291, %v2796_v17  }
  0x99   : > { %2245 = vset.pattern.permute.xlu2 %v2778_v14  ;;  %2244 = vset.pattern.permute.xlu1 %v2799_v18 }
  0x9f   : > { %2296 = vset.pattern.permute.xlu0 %v2772_v13 }
  0xa1   : > { %335 = vperm.xlu2 %2245, %v2736_v6   ;;  %329 = vperm.xlu1 %2244, %v2736_v6  }
  0xa7   : > { %687 = vperm.xlu0 %2296, %v2796_v17  }
  0xa9   : > { %2247 = vset.pattern.permute.xlu2 %v2808_v19  ;;  %2246 = vset.pattern.permute.xlu1 %v2722_v2 }
  0xab   : > { %v270_v37 = vpop.permute.xlu2 %269 }
  0xac   : > { %vm1020_vm1 = vcmp.eq.s32.totalorder %v270_v37, %v2933_v50 }
  0xad   : > { %v1172_v60 = vsel %vm1020_vm1, %v2946_v54, 0.0 }
  0xaf   : > { %2301 = vset.pattern.permute.xlu0 %v2799_v18 }
  0xb1   : > { %348 = vperm.xlu2 %2247, %v337_v20   ;;  %342 = vperm.xlu1 %2246, %v337_v20  }
  0xb7   : > { %717 = vperm.xlu0 %2301, %v2796_v17  }
  0xb9   : > { %2249 = vset.pattern.permute.xlu2 %v2726_v3  ;;  %2248 = vset.pattern.permute.xlu1 %v2748_v9 }
  0xbb   : > { %v2912_v40 = vpop.permute.xlu2 %275 }
  0xbf   : > { %2306 = vset.pattern.permute.xlu0 %v2748_v9 }
  0xc1   : > { %366 = vperm.xlu2 %2249, %v337_v20   ;;  %360 = vperm.xlu1 %2248, %v337_v20   ;;  %v2860_v26 = vpop.permute.xlu0 %245 }
  0xc2   : > { %vm1016_vm0 = vcmp.eq.s32.totalorder %v2860_v26, %v2933_v50 }
  0xc3   : > { %v2905_v38 = vpop.permute.xlu1 %257  ;;  %v1168_v56 = vsel %vm1016_vm0, %v2946_v54, 0.0 }
  0xc7   : > { %748 = vperm.xlu0 %2306, %v2820_v21  }
  0xc9   : > { %2251 = vset.pattern.permute.xlu2 %v2760_v11  ;;  %2250 = vset.pattern.permute.xlu1 %v2745_v8  ;;  %v2863_v27 = vpop.permute.xlu0 %536 }
  0xca   : > { %4035 = vst [vmem:[#allocation14_spill] sm:$0xff] %v2863_v27 }
  0xcb   : > { %v288_v43 = vpop.permute.xlu2 %287 }
  0xcc   : > { %vm1023_vm2 = vcmp.eq.s32.totalorder %v288_v43, %v2933_v50 }
  0xcd   : > { %v1175_v63 = vsel %vm1023_vm2, %v2946_v54, 0.0 }
  0xcf   : > { %2307 = vset.pattern.permute.xlu0 %v2826_v22 }
  0xd1   : > { %378 = vperm.xlu2 %2251, %v337_v20   ;;  %372 = vperm.xlu1 %2250, %v337_v20  }
  0xd3   : > { %v2914_v41 = vpop.permute.xlu1 %263 }
  0xd7   : > { %293 = vperm.xlu0 %2307, %v2736_v6  }
  0xd9   : > { %2253 = vset.pattern.permute.xlu2 %v2772_v13  ;;  %2252 = vset.pattern.permute.xlu1 %v2826_v22  ;;  %v2868_v28 = vpop.permute.xlu0 %566 }
  0xda   : > { %4036 = vst [vmem:[#allocation15_spill] sm:$0xff] %v2868_v28  ;;  %v1146_v28 = vrot.slane %v2939_v52, 2 }
  0xdb   : > { %v306_v45 = vpop.permute.xlu2 %305 }
  0xdc   : > { %vm1026_vm3 = vcmp.eq.s32.totalorder %v306_v45, %v2933_v50 }
  0xdf   : > { %778 = vperm.xlu0 %2307, %v2820_v21  }
  0xe1   : > { %396 = vperm.xlu2 %2253, %v337_v20   ;;  %390 = vperm.xlu1 %2252, %v337_v20  }
  0xe3   : > { %v2918_v44 = vpop.permute.xlu1 %281 }
  0xe7   : > { %2312 = vset.pattern.permute.xlu0 %v2834_v23 }
  0xe9   : > { %2255 = vset.pattern.permute.xlu2 %v2787_v16  ;;  %2254 = vset.pattern.permute.xlu1 %v2766_v12  ;;  %v2871_v29 = vpop.permute.xlu0 %596 }
  0xeb   : > { %v2935_v51 = vpop.permute.xlu2 %317 }
  0xef   : > { %323 = vperm.xlu0 %2312, %v2736_v6  }
  0xf1   : > { %408 = vperm.xlu2 %2255, %v337_v20   ;;  %402 = vperm.xlu1 %2254, %v337_v20  }
  0xf3   : > { %v2922_v46 = vpop.permute.xlu1 %299 }
  0xf7   : > { %808 = vperm.xlu0 %2312, %v2820_v21  }
  0xf9   : > { %2257 = vset.pattern.permute.xlu2 %v2799_v18  ;;  %2256 = vset.pattern.permute.xlu1 %v2834_v23  ;;  %v2878_v31 = vpop.permute.xlu0 %626 }
  0xfa   : > { %4037 = vst [vmem:[#allocation16_spill] sm:$0xff] %v2878_v31 }
  0xfb   : > { %v2953_v57 = vpop.permute.xlu2 %335 }
  0xff   : > { %2317 = vset.pattern.permute.xlu0 %v2729_v4 }
 0x101   : > { %426 = vperm.xlu2 %2257, %v337_v20   ;;  %420 = vperm.xlu1 %2256, %v337_v20  }
 0x103   : > { %v2941_v53 = vpop.permute.xlu1 %311 }
 0x107   : > { %354 = vperm.xlu0 %2317, %v337_v20  }
 0x109   : > { %2259 = vset.pattern.permute.xlu2 %v2722_v2  ;;  %2258 = vset.pattern.permute.xlu1 %v2778_v14  ;;  %v2881_v32 = vpop.permute.xlu0 %657 }
 0x10a   : > { %4038 = vst [vmem:[#allocation17_spill] sm:$0xff] %v2881_v32 }
 0x10b   : > { %v2963_v61 = vpop.permute.xlu2 %348 }
 0x10f   : > { %839 = vperm.xlu0 %2317, %v2847_v24  }
 0x111   : > { %439 = vperm.xlu2 %2259, %v434_v25   ;;  %432 = vperm.xlu1 %2258, %v337_v20  }
 0x113   : > { %v2955_v58 = vpop.permute.xlu1 %329 }
 0x117   : > { %2322 = vset.pattern.permute.xlu0 %v2757_v10 }
 0x119   : > { %2261 = vset.pattern.permute.xlu2 %v2748_v9  ;;  %2260 = vset.pattern.permute.xlu1 %v2729_v4  ;;  %v2886_v33 = vpop.permute.xlu0 %687 }
 0x11b   : > { %v2971_v1 = vpop.permute.xlu2 %366 }
 0x11f   : > { %384 = vperm.xlu0 %2322, %v337_v20  }
 0x121   : > { %457 = vperm.xlu2 %2261, %v434_v25   ;;  %451 = vperm.xlu1 %2260, %v434_v25  }
 0x123   : > { %v343_v62 = vpop.permute.xlu1 %342 }
 0x124   : > { %vm1032_vm5 = vcmp.eq.s32.totalorder %v343_v62, %v2933_v50 }
 0x127   : > { %869 = vperm.xlu0 %2322, %v2847_v24  }
 0x129   : > { %2263 = vset.pattern.permute.xlu2 %v2745_v8  ;;  %2262 = vset.pattern.permute.xlu1 %v2726_v3  ;;  %v2891_v34 = vpop.permute.xlu0 %717 }
 0x12a   : > { %4039 = vst [vmem:[#allocation18_spill] sm:$0xff] %v2891_v34 }
 0x12f   : > { %2327 = vset.pattern.permute.xlu0 %v2784_v15 }
 0x131   : > { %469 = vperm.xlu2 %2263, %v434_v25   ;;  %463 = vperm.xlu1 %2262, %v434_v25  }
 0x133   : > { %v361_v5 = vpop.permute.xlu1 %360 }
 0x134   : > { %vm1035_vm6 = vcmp.eq.s32.totalorder %v361_v5, %v2933_v50 }
 0x137   : > { %414 = vperm.xlu0 %2327, %v337_v20   ;;  %v379_v20 = vpop.permute.xlu2 %378 }
 0x138   : > { %vm1038_vm7 = vcmp.eq.s32.totalorder %v379_v20, %v2933_v50 }
 0x139   : > { %2265 = vset.pattern.permute.xlu2 %v2826_v22  ;;  %2264 = vset.pattern.permute.xlu1 %v2757_v10  ;;  %v2896_v35 = vpop.permute.xlu0 %748 }
 0x13a   : > { %4040 = vst [vmem:[#allocation19_spill] sm:$0xff] %v2896_v35 }
 0x13f   : > { %899 = vperm.xlu0 %2327, %v2847_v24   ;;  %v397_v43 = vpop.permute.xlu2 %396 }
 0x140   : > { %vm1041_vm8 = vcmp.eq.s32.totalorder %v397_v43, %v2933_v50 }
 0x141   : > { %487 = vperm.xlu2 %2265, %v434_v25   ;;  %481 = vperm.xlu1 %2264, %v434_v25  }
 0x147   : > { %2332 = vset.pattern.permute.xlu0 %v2808_v19 }
 0x149   : > { %2267 = vset.pattern.permute.xlu2 %v2766_v12  ;;  %2266 = vset.pattern.permute.xlu1 %v2772_v13  ;;  %v2900_v36 = vpop.permute.xlu0 %293 }
 0x14f   : > { %251 = vperm.xlu0 %2332, %v2736_v6   ;;  %v1178_v6 = vsel %vm1026_vm3, %v2946_v54, 0.0  ;;  %vm1074_vm3 = vcmp.eq.s32.totalorder %v2871_v29, %v2933_v50 }
 0x151   : > { %499 = vperm.xlu2 %2267, %v434_v25   ;;  %493 = vperm.xlu1 %2266, %v434_v25   ;;  %v2907_v39 = vpop.permute.xlu0 %778 }
 0x157   : > { %445 = vperm.xlu0 %2332, %v434_v25  }
 0x159   : > { %2269 = vset.pattern.permute.xlu2 %v2834_v23  ;;  %2268 = vset.pattern.permute.xlu1 %v2784_v15 }
 0x15f   : > { %930 = vperm.xlu0 %2332, %v2876_v30  }
 0x161   : > { %517 = vperm.xlu2 %2269, %v434_v25   ;;  %511 = vperm.xlu1 %2268, %v434_v25   ;;  %v324_v42 = vpop.permute.xlu0 %323 }
 0x162   : > { %vm1029_vm4 = vcmp.eq.s32.totalorder %v324_v42, %v2933_v50 }
 0x163   : > { %v1181_v37 = vsel %vm1029_vm4, %v2946_v54, 0.0 }
 0x167   : > { %2337 = vset.pattern.permute.xlu0 %v2760_v11 }
 0x169   : > { %2271 = vset.pattern.permute.xlu2 %v2778_v14  ;;  %2270 = vset.pattern.permute.xlu1 %v2799_v18  ;;  %v2924_v47 = vpop.permute.xlu0 %808 }
 0x16a   : > { %4041 = vst [vmem:[#allocation20_spill] sm:$0xff] %v2924_v47 }
 0x16f   : > { %475 = vperm.xlu0 %2337, %v434_v25  }
 0x171   : > { %529 = vperm.xlu2 %2271, %v434_v25   ;;  %523 = vperm.xlu1 %2270, %v434_v25  }
 0x177   : > { %960 = vperm.xlu0 %2337, %v2876_v30  }
 0x179   : > { %2273 = vset.pattern.permute.xlu2 %v2729_v4  ;;  %2272 = vset.pattern.permute.xlu1 %v2808_v19  ;;  %v2948_v55 = vpop.permute.xlu0 %354 }
 0x17f   : > { %2342 = vset.pattern.permute.xlu0 %v2787_v16 }
 0x181   : > { %548 = vperm.xlu2 %2273, %v2742_v7   ;;  %542 = vperm.xlu1 %2272, %v2742_v7   ;;  %v2958_v59 = vpop.permute.xlu0 %839 }
 0x182   : > { %4043 = vst [vmem:[#allocation22_spill] sm:$0xff] %v2958_v59 }
 0x187   : > { %505 = vperm.xlu0 %2342, %v434_v25   ;;  %v2977_v25 = vpop.permute.xlu1 %372 }
 0x189   : > { %2275 = vset.pattern.permute.xlu2 %v2726_v3  ;;  %2274 = vset.pattern.permute.xlu1 %v2748_v9 }
 0x18f   : > { %990 = vperm.xlu0 %2342, %v2876_v30   ;;  %v2985_v45 = vpop.permute.xlu1 %390 }
 0x191   : > { %560 = vperm.xlu2 %2275, %v2742_v7   ;;  %554 = vperm.xlu1 %2274, %v2742_v7   ;;  %v2969_v0 = vpop.permute.xlu0 %384 }
 0x197   : > { %2351 = vset.pattern.permute.xlu0 %v2778_v14 }
 0x199   : > { %2278 = vset.pattern.permute.xlu2 %v2757_v10  ;;  %2277 = vset.pattern.permute.xlu1 %v2760_v11  ;;  %v2979_v26 = vpop.permute.xlu0 %869 }
 0x1a1   : > { %578 = vperm.xlu2 %2278, %v2742_v7   ;;  %572 = vperm.xlu1 %2277, %v2742_v7  }
 0x1a9   : > { %2280 = vset.pattern.permute.xlu2 %v2772_v13  ;;  %2279 = vset.pattern.permute.xlu1 %v2826_v22  ;;  %v415_v49 = vpop.permute.xlu0 %414 }
 0x1aa   : > { %vm1044_vm9 = vcmp.eq.s32.totalorder %v415_v49, %v2933_v50 }
 0x1b1   : > { %590 = vperm.xlu2 %2280, %v2742_v7   ;;  %584 = vperm.xlu1 %2279, %v2742_v7  }
 0x1b9   : > { %2283 = vset.pattern.permute.xlu2 %v2784_v15  ;;  %2282 = vset.pattern.permute.xlu1 %v2787_v16 }
 0x1ba   : > { %1297 = vadd.xlane.f32.xlu0 %v1168_v56 }
 0x1c1   : > { %608 = vperm.xlu2 %2283, %v2742_v7   ;;  %602 = vperm.xlu1 %2282, %v2742_v7  }
 0x1c2   : > { %1305 = vadd.xlane.f32.xlu0 %v1172_v60  ;;  %v2994_v60 = vpop.permute.xlu2 %408 }
 0x1c9   : > { %2285 = vset.pattern.permute.xlu2 %v2799_v18  ;;  %2284 = vset.pattern.permute.xlu1 %v2834_v23 }
 0x1ca   : > { %1311 = vadd.xlane.f32.xlu0 %v1175_v63  ;;  %v2996_v63 = vpop.permute.xlu1 %402 }
 0x1d1   : > { %620 = vperm.xlu2 %2285, %v2742_v7   ;;  %614 = vperm.xlu1 %2284, %v2742_v7   ;;  %v1145_v7 = vrot.slane %v2939_v52, 1 }
 0x1d2   : > { %1317 = vadd.xlane.f32.xlu0 %v1178_v6  ;;  %v2999_v6 = vpop.permute.xlu0 %899 }
 0x1d3   : > { %v2989_v56 = vperm.slane %v1145_v7, 0  ;;  %4044 = vst [vmem:[#allocation23_spill] sm:$0xff] %v2999_v6  ;;  %v3006_v7 = vpop.permute.xlu1 %420 }
 0x1d5   : > { %v1184_v42 = vsel %vm1032_vm5, %v2989_v56, 0.0  ;;  %v1187_v62 = vsel %vm1035_vm6, %v2989_v56, 0.0  ;;  %v1190_v5 = vsel %vm1038_vm7, %v2989_v56, 0.0  ;;  %v1193_v20 = vsel %vm1041_vm8, %v2989_v56, 0.0 }
 0x1d6   : > { %v1196_v34 = vsel %vm1044_vm9, %v2989_v56, 0.0  ;;  %vm1089_vm8 = vcmp.eq.s32.totalorder %v2886_v33, %v2933_v50 }
 0x1d9   : > { %2288 = vset.pattern.permute.xlu2 %v2808_v19  ;;  %2287 = vset.pattern.permute.xlu1 %v2722_v2 }
 0x1da   : > { %1323 = vadd.xlane.f32.xlu0 %v1181_v37  ;;  %v3004_v37 = vpop.permute.xlu2 %426 }
 0x1db   : > { %v433_v59 = vpop.permute.xlu1 %432 }
 0x1dc   : > { %vm1047_vm10 = vcmp.eq.s32.totalorder %v433_v59, %v2933_v50 }
 0x1dd   : > { %v1199_v49 = vsel %vm1047_vm10, %v2989_v56, 0.0 }
 0x1e1   : > { %639 = vperm.xlu2 %2288, %v2796_v17   ;;  %633 = vperm.xlu1 %2287, %v2796_v17  }
 0x1e2   : > { %1329 = vadd.xlane.f32.xlu0 %v1184_v42  ;;  %v3012_v42 = vpop.permute.xlu0 %251  ;;  %v3014_v6 = vpop.permute.xlu2 %439 }
 0x1e3   : > { %v452_v47 = vpop.permute.xlu1 %451 }
 0x1e4   : > { %vm1050_vm11 = vcmp.eq.s32.totalorder %v452_v47, %v2933_v50 }
 0x1e9   : > { %2290 = vset.pattern.permute.xlu2 %v2748_v9  ;;  %2289 = vset.pattern.permute.xlu1 %v2729_v4 }
 0x1ea   : > { %1335 = vadd.xlane.f32.xlu0 %v1187_v62  ;;  %v3020_v62 = vpop.permute.xlu2 %457  ;;  %v3022_v35 = vpop.permute.xlu0 %445 }
 0x1f1   : > { %651 = vperm.xlu2 %2290, %v2796_v17   ;;  %645 = vperm.xlu1 %2289, %v2796_v17  }
 0x1f2   : > { %1341 = vadd.xlane.f32.xlu0 %v1190_v5  ;;  %v470_v43 = vpop.permute.xlu2 %469  ;;  %v3028_v5 = vpop.permute.xlu1 %463 }
 0x1f3   : > { %v3030_v32 = vpop.permute.xlu0 %930  ;;  %vm1053_vm12 = vcmp.eq.s32.totalorder %v470_v43, %v2933_v50 }
 0x1f9   : > { %2293 = vset.pattern.permute.xlu2 %v2760_v11  ;;  %2292 = vset.pattern.permute.xlu1 %v2745_v8 }
 0x1fa   : > { %1347 = vadd.xlane.f32.xlu0 %v1193_v20  ;;  %v488_v20 = vpop.permute.xlu2 %487  ;;  %v3036_v31 = vpop.permute.xlu1 %481 }
 0x1fb   : > { %4045 = vst [vmem:[#allocation24_spill] sm:$0xff] %v3036_v31  ;;  %v3042_v27 = vpop.permute.xlu0 %475  ;;  %vm1056_vm13 = vcmp.eq.s32.totalorder %v488_v20, %v2933_v50 }
 0x1fc   : > { %4046 = vst [vmem:[#allocation25_spill] sm:$0xff] %v3042_v27 }
 0x201   : > { %669 = vperm.xlu2 %2293, %v2796_v17   ;;  %663 = vperm.xlu1 %2292, %v2796_v17  }
 0x202   : > { %1353 = vadd.xlane.f32.xlu0 %v1196_v34  ;;  %v3040_v34 = vperm.slane %v1146_v28, 0  ;;  %v3047_v48 = vpop.permute.xlu2 %499 }
 0x203   : > { %4047 = vst [vmem:[#allocation26_spill] sm:$0xff] %v3047_v48  ;;  %v3052_v31 = vpop.permute.xlu0 %960 }
 0x204   : > { %v1202_v59 = vsel %vm1050_vm11, %v3040_v34, 0.0  ;;  %4049 = vst [vmem:[#allocation28_spill] sm:$0xff] %v3052_v31  ;;  %v1205_v28 = vsel %vm1053_vm12, %v3040_v34, 0.0  ;;  %v1208_v43 = vsel %vm1056_vm13, %v3040_v34, 0.0  ;;  %vm1104_vm13 = vcmp.eq.s32.totalorder %v2907_v39, %v2933_v50 }
 0x209   : > { %2295 = vset.pattern.permute.xlu2 %v2826_v22  ;;  %2294 = vset.pattern.permute.xlu1 %v2757_v10 }
 0x20a   : > { %1359 = vadd.xlane.f32.xlu0 %v1199_v49  ;;  %v3049_v49 = vpop.permute.xlu1 %493  ;;  %v3057_v47 = vpop.permute.xlu2 %517 }
 0x20b   : > { %4048 = vst [vmem:[#allocation27_spill] sm:$0xff] %v3049_v49  ;;  %v506_v48 = vpop.permute.xlu0 %505 }
 0x20c   : > { %4050 = vst [vmem:[#allocation29_spill] sm:$0xff] %v3057_v47  ;;  %vm1059_vm14 = vcmp.eq.s32.totalorder %v506_v48, %v2933_v50 }
 0x20d   : > { %v1211_v47 = vsel %vm1059_vm14, %v3040_v34, 0.0 }
 0x211   : > { %681 = vperm.xlu2 %2295, %v2796_v17   ;;  %675 = vperm.xlu1 %2294, %v2796_v17  }
 0x212   : > { %1365 = vadd.xlane.f32.xlu0 %v1202_v59  ;;  %v3059_v27 = vpop.permute.xlu1 %511  ;;  %v3065_v59 = vpop.permute.xlu2 %529 }
 0x213   : > { %4051 = vst [vmem:[#allocation30_spill] sm:$0xff] %v3059_v27  ;;  %v1147_v27 = vrot.slane %v2939_v52, 3 }
 0x214   : > { %4052 = vst [vmem:[#allocation31_spill] sm:$0xff] %v3065_v59 }
 0x219   : > { %2298 = vset.pattern.permute.xlu2 %v2787_v16  ;;  %2297 = vset.pattern.permute.xlu1 %v2766_v12 }
 0x21a   : > { %1371 = vadd.xlane.f32.xlu0 %v1205_v28  ;;  %v524_v31 = vpop.permute.xlu1 %523  ;;  %v3071_v20 = vpop.permute.xlu2 %548 }
 0x21b   : > { %4053 = vst [vmem:[#allocation32_spill] sm:$0xff] %v3071_v20  ;;  %vm1062_vm15 = vcmp.eq.s32.totalorder %v524_v31, %v2933_v50 }
 0x221   : > { %699 = vperm.xlu2 %2298, %v2796_v17   ;;  %693 = vperm.xlu1 %2297, %v2796_v17  }
 0x222   : > { %1377 = vadd.xlane.f32.xlu0 %v1208_v43  ;;  %v543_v28 = vpop.permute.xlu1 %542  ;;  %v1214_v43 = vsel %vm1062_vm15, %v3040_v34, 0.0  ;;  %v561_v48 = vpop.permute.xlu2 %560 }
 0x223   : > { %vm1065_vm0 = vcmp.eq.s32.totalorder %v543_v28, %v2933_v50  ;;  %vm1068_vm1 = vcmp.eq.s32.totalorder %v561_v48, %v2933_v50 }
 0x229   : > { %2300 = vset.pattern.permute.xlu2 %v2834_v23  ;;  %2299 = vset.pattern.permute.xlu1 %v2784_v15 }
 0x22a   : > { %1383 = vadd.xlane.f32.xlu0 %v1211_v47  ;;  %v3077_v59 = vpop.permute.xlu1 %554  ;;  %v3081_v47 = vperm.slane %v1147_v27, 0  ;;  %v579_v20 = vpop.permute.xlu2 %578 }
 0x22b   : > { %vm1071_vm2 = vcmp.eq.s32.totalorder %v579_v20, %v2933_v50 }
 0x22c   : > { %v1217_v31 = vsel %vm1065_vm0, %v3081_v47, 0.0  ;;  %v1220_v28 = vsel %vm1068_vm1, %v3081_v47, 0.0 }
 0x231   : > { %711 = vperm.xlu2 %2300, %v2796_v17   ;;  %705 = vperm.xlu1 %2299, %v2796_v17  }
 0x232   : > { %1389 = vadd.xlane.f32.xlu0 %v1214_v43  ;;  %v3086_v49 = vpop.permute.xlu1 %572  ;;  %v3092_v27 = vpop.permute.xlu2 %590 }
 0x233   : > { %4054 = vst [vmem:[#allocation33_spill] sm:$0xff] %v3086_v49 }
 0x239   : > { %2303 = vset.pattern.permute.xlu2 %v2722_v2  ;;  %2302 = vset.pattern.permute.xlu1 %v2778_v14 }
 0x23a   : > { %1395 = vadd.xlane.f32.xlu0 %v1217_v31  ;;  %v3094_v43 = vpop.permute.xlu1 %584  ;;  %v1223_v31 = vsel %vm1071_vm2, %v3081_v47, 0.0  ;;  %v3100_v48 = vpop.permute.xlu2 %608  ;;  %vm1119_vm2 = vcmp.eq.s32.totalorder %v2979_v26, %v2933_v50 }
 0x23b   : > { %4055 = vst [vmem:[#allocation34_spill] sm:$0xff] %v3100_v48 }
 0x241   : > { %730 = vperm.xlu2 %2303, %v2820_v21   ;;  %723 = vperm.xlu1 %2302, %v2796_v17   ;;  %v1226_v17 = vsel %vm1074_vm3, %v3081_v47, 0.0  ;;  %vm1129_vm3 = vcmp.eq.s32.totalorder %v3030_v32, %v2933_v50 }
 0x242   : > { %1401 = vadd.xlane.f32.xlu0 %v1220_v28  ;;  %v3102_v49 = vpop.permute.xlu1 %602  ;;  %v3109_v20 = vpop.permute.xlu2 %620 }
 0x243   : > { %4056 = vst [vmem:[#allocation35_spill] sm:$0xff] %v3102_v49  ;;  %v1148_v49 = vrot.slane %v2939_v52, 4 }
 0x244   : > { %4057 = vst [vmem:[#allocation36_spill] sm:$0xff] %v3109_v20 }
 0x249   : > { %2305 = vset.pattern.permute.xlu2 %v2729_v4  ;;  %2304 = vset.pattern.permute.xlu1 %v2808_v19 }
 0x24a   : > { %1407 = vadd.xlane.f32.xlu0 %v1223_v31  ;;  %v615_v28 = vpop.permute.xlu1 %614  ;;  %v3115_v29 = vpop.permute.xlu2 %639 }
 0x24b   : > { %vm1077_vm4 = vcmp.eq.s32.totalorder %v615_v28, %v2933_v50 }
 0x24c   : > { %v1229_v31 = vsel %vm1077_vm4, %v3081_v47, 0.0  ;;  %vm1017_vm4 = vcmp.eq.s32.totalorder %v3012_v42, %v2933_v50 }
 0x24d   : > { %v1169_v26 = vsel %vm1017_vm4, %v2946_v54, 0.0  ;;  %vm1034_vm4 = vcmp.eq.s32.totalorder %v2948_v55, %v2933_v50 }
 0x251   : > { %742 = vperm.xlu2 %2305, %v2820_v21   ;;  %736 = vperm.xlu1 %2304, %v2820_v21  }
 0x252   : > { %1413 = vadd.xlane.f32.xlu0 %v1226_v17  ;;  %v3119_v17 = vperm.slane %v1148_v49, 0  ;;  %v652_v20 = vpop.permute.xlu2 %651 }
 0x253   : > { %v634_v48 = vpop.permute.xlu1 %633  ;;  %vm1083_vm6 = vcmp.eq.s32.totalorder %v652_v20, %v2933_v50 }
 0x254   : > { %vm1080_vm5 = vcmp.eq.s32.totalorder %v634_v48, %v2933_v50 }
 0x255   : > { %v1232_v28 = vsel %vm1080_vm5, %v3119_v17, 0.0  ;;  %vm1018_vm5 = vcmp.eq.s32.totalorder %v2905_v38, %v2933_v50 }
 0x259   : > { %2309 = vset.pattern.permute.xlu2 %v2745_v8  ;;  %2308 = vset.pattern.permute.xlu1 %v2726_v3 }
 0x25a   : > { %1419 = vadd.xlane.f32.xlu0 %v1229_v31  ;;  %v1235_v31 = vsel %vm1083_vm6, %v3119_v17, 0.0  ;;  %vm1019_vm6 = vcmp.eq.s32.totalorder %v2914_v41, %v2933_v50 }
 0x25b   : > { %v670_v48 = vpop.permute.xlu2 %669  ;;  %v1171_v38 = vsel %vm1019_vm6, %v2946_v54, 0.0 }
 0x25c   : > { %vm1086_vm7 = vcmp.eq.s32.totalorder %v670_v48, %v2933_v50 }
 0x25d   : > { %v1238_v49 = vsel %vm1086_vm7, %v3119_v17, 0.0  ;;  %vm1021_vm7 = vcmp.eq.s32.totalorder %v2912_v40, %v2933_v50 }
 0x261   : > { %760 = vperm.xlu2 %2309, %v2820_v21   ;;  %754 = vperm.xlu1 %2308, %v2820_v21  }
 0x262   : > { %1425 = vadd.xlane.f32.xlu0 %v1232_v28  ;;  %v1241_v28 = vsel %vm1089_vm8, %v3119_v17, 0.0 }
 0x263   : > { %v3138_v20 = vpop.permute.xlu1 %645 }
 0x264   : > { %4058 = vst [vmem:[#allocation37_spill] sm:$0xff] %v3138_v20 }
 0x269   : > { %2311 = vset.pattern.permute.xlu2 %v2757_v10  ;;  %2310 = vset.pattern.permute.xlu1 %v2760_v11 }
 0x26a   : > { %1431 = vadd.xlane.f32.xlu0 %v1235_v31 }
 0x271   : > { %772 = vperm.xlu2 %2311, %v2820_v21   ;;  %766 = vperm.xlu1 %2310, %v2820_v21  }
 0x272   : > { %1437 = vadd.xlane.f32.xlu0 %v1238_v49  ;;  %v3149_v49 = vpop.permute.xlu2 %681 }
 0x273   : > { %v3143_v31 = vpop.permute.xlu1 %663  ;;  %4061 = vst [vmem:[#allocation40_spill] sm:$0xff] %v3149_v49 }
 0x274   : > { %4059 = vst [vmem:[#allocation38_spill] sm:$0xff] %v3143_v31 }
 0x279   : > { %2314 = vset.pattern.permute.xlu2 %v2766_v12  ;;  %2313 = vset.pattern.permute.xlu1 %v2772_v13 }
 0x27a   : > { %1443 = vadd.xlane.f32.xlu0 %v1241_v28 }
 0x27b   : > { %v3155_v28 = vpop.permute.xlu2 %699 }
 0x27c   : > { %4062 = vst [vmem:[#allocation41_spill] sm:$0xff] %v3155_v28 }
 0x281   : > { %790 = vperm.xlu2 %2314, %v2820_v21   ;;  %784 = vperm.xlu1 %2313, %v2820_v21  }
 0x283   : > { %v3147_v48 = vpop.permute.xlu1 %675 }
 0x284   : > { %4060 = vst [vmem:[#allocation39_spill] sm:$0xff] %v3147_v48 }
 0x289   : > { %2316 = vset.pattern.permute.xlu2 %v2784_v15  ;;  %2315 = vset.pattern.permute.xlu1 %v2787_v16 }
 0x28b   : > { %v3161_v48 = vpop.permute.xlu2 %711 }
 0x28c   : > { %4063 = vst [vmem:[#allocation42_spill] sm:$0xff] %v3161_v48 }
 0x291   : > { %802 = vperm.xlu2 %2316, %v2820_v21   ;;  %796 = vperm.xlu1 %2315, %v2820_v21  }
 0x293   : > { %v3153_v33 = vpop.permute.xlu1 %693 }
 0x299   : > { %2319 = vset.pattern.permute.xlu2 %v2778_v14  ;;  %2318 = vset.pattern.permute.xlu1 %v2799_v18 }
 0x29b   : > { %v3165_v49 = vpop.permute.xlu2 %730 }
 0x29c   : > { %4064 = vst [vmem:[#allocation43_spill] sm:$0xff] %v3165_v49 }
 0x2a1   : > { %820 = vperm.xlu2 %2319, %v2820_v21   ;;  %814 = vperm.xlu1 %2318, %v2820_v21  }
 0x2a3   : > { %v706_v31 = vpop.permute.xlu1 %705 }
 0x2a4   : > { %vm1092_vm9 = vcmp.eq.s32.totalorder %v706_v31, %v2933_v50 }
 0x2a5   : > { %v1244_v20 = vsel %vm1092_vm9, %v3119_v17, 0.0  ;;  %vm1022_vm9 = vcmp.eq.s32.totalorder %v2918_v44, %v2933_v50 }
 0x2a6   : > { %1449 = vadd.xlane.f32.xlu0 %v1244_v20  ;;  %v1149_v20 = vrot.slane %v2939_v52, 5  ;;  %v1174_v41 = vsel %vm1022_vm9, %v2946_v54, 0.0 }
 0x2a9   : > { %2321 = vset.pattern.permute.xlu2 %v2808_v19  ;;  %2320 = vset.pattern.permute.xlu1 %v2722_v2  ;;  %v3175_v19 = vperm.slane %v1149_v20, 0 }
 0x2ab   : > { %v743_v31 = vpop.permute.xlu2 %742 }
 0x2ac   : > { %vm1098_vm11 = vcmp.eq.s32.totalorder %v743_v31, %v2933_v50 }
 0x2ad   : > { %v1250_v49 = vsel %vm1098_vm11, %v3175_v19, 0.0  ;;  %vm1025_vm11 = vcmp.eq.s32.totalorder %v2922_v46, %v2933_v50 }
 0x2ae   : > { %v1177_v44 = vsel %vm1025_vm11, %v2946_v54, 0.0  ;;  %vm1042_vm11 = vcmp.eq.s32.totalorder %v2996_v63, %v2933_v50 }
 0x2b1   : > { %833 = vperm.xlu2 %2321, %v2847_v24   ;;  %827 = vperm.xlu1 %2320, %v2847_v24  }
 0x2b3   : > { %v724_v28 = vpop.permute.xlu1 %723 }
 0x2b4   : > { %vm1095_vm10 = vcmp.eq.s32.totalorder %v724_v28, %v2933_v50 }
 0x2b5   : > { %v1247_v21 = vsel %vm1095_vm10, %v3119_v17, 0.0  ;;  %vm1024_vm10 = vcmp.eq.s32.totalorder %v2900_v36, %v2933_v50 }
 0x2b6   : > { %1455 = vadd.xlane.f32.xlu0 %v1247_v21 }
 0x2b9   : > { %2324 = vset.pattern.permute.xlu2 %v2726_v3  ;;  %2323 = vset.pattern.permute.xlu1 %v2748_v9 }
 0x2bb   : > { %v761_v48 = vpop.permute.xlu2 %760 }
 0x2bc   : > { %vm1101_vm12 = vcmp.eq.s32.totalorder %v761_v48, %v2933_v50  ;;  %v1256_v48 = vsel %vm1104_vm13, %v3175_v19, 0.0 }
 0x2bd   : > { %v1253_v28 = vsel %vm1101_vm12, %v3175_v19, 0.0  ;;  %vm1027_vm12 = vcmp.eq.s32.totalorder %v2941_v53, %v2933_v50  ;;  %v3327_v53 = vpop.permute.xlu0 %990 }
 0x2be   : > { %1461 = vadd.xlane.f32.xlu0 %v1250_v49  ;;  %v1179_v36 = vsel %vm1027_vm12, %v2946_v54, 0.0 }
 0x2c1   : > { %851 = vperm.xlu2 %2324, %v2847_v24   ;;  %845 = vperm.xlu1 %2323, %v2847_v24  }
 0x2c6   : > { %1467 = vadd.xlane.f32.xlu0 %v1253_v28 }
 0x2c9   : > { %2326 = vset.pattern.permute.xlu2 %v2760_v11  ;;  %2325 = vset.pattern.permute.xlu1 %v2745_v8  ;;  %v3193_v11 = vpop.permute.xlu1 %736 }
 0x2cb   : > { %v3203_v21 = vpop.permute.xlu2 %772 }
 0x2cc   : > { %4065 = vst [vmem:[#allocation44_spill] sm:$0xff] %v3203_v21 }
 0x2ce   : > { %1473 = vadd.xlane.f32.xlu0 %v1256_v48 }
 0x2d1   : > { %863 = vperm.xlu2 %2326, %v2847_v24   ;;  %857 = vperm.xlu1 %2325, %v2847_v24  }
 0x2d3   : > { %v3197_v49 = vpop.permute.xlu1 %754 }
 0x2d9   : > { %2329 = vset.pattern.permute.xlu2 %v2772_v13  ;;  %2328 = vset.pattern.permute.xlu1 %v2826_v22 }
 0x2db   : > { %v3209_v20 = vpop.permute.xlu2 %790 }
 0x2dc   : > { %4067 = vst [vmem:[#allocation46_spill] sm:$0xff] %v3209_v20 }
 0x2e1   : > { %881 = vperm.xlu2 %2329, %v2847_v24   ;;  %875 = vperm.xlu1 %2328, %v2847_v24  }
 0x2e3   : > { %v3201_v39 = vpop.permute.xlu1 %766 }
 0x2e9   : > { %2331 = vset.pattern.permute.xlu2 %v2787_v16  ;;  %2330 = vset.pattern.permute.xlu1 %v2766_v12 }
 0x2eb   : > { %v3215_v48 = vpop.permute.xlu2 %802 }
 0x2f1   : > { %893 = vperm.xlu2 %2331, %v2847_v24   ;;  %887 = vperm.xlu1 %2330, %v2847_v24  }
 0x2f3   : > { %v3207_v31 = vpop.permute.xlu1 %784 }
 0x2f4   : > { %4066 = vst [vmem:[#allocation45_spill] sm:$0xff] %v3207_v31  ;;  %v1150_v31 = vrot.slane %v2939_v52, 6 }
 0x2f9   : > { %2334 = vset.pattern.permute.xlu2 %v2799_v18  ;;  %2333 = vset.pattern.permute.xlu1 %v2834_v23 }
 0x2fb   : > { %v3219_v21 = vpop.permute.xlu2 %820 }
 0x2fc   : > { %4068 = vst [vmem:[#allocation47_spill] sm:$0xff] %v3219_v21 }
 0x301   : > { %911 = vperm.xlu2 %2334, %v2847_v24   ;;  %905 = vperm.xlu1 %2333, %v2847_v24  }
 0x303   : > { %v797_v16 = vpop.permute.xlu1 %796 }
 0x304   : > { %vm1107_vm14 = vcmp.eq.s32.totalorder %v797_v16, %v2933_v50 }
 0x305   : > { %v1259_v28 = vsel %vm1107_vm14, %v3175_v19, 0.0  ;;  %vm1028_vm14 = vcmp.eq.s32.totalorder %v2935_v51, %v2933_v50 }
 0x306   : > { %1479 = vadd.xlane.f32.xlu0 %v1259_v28 }
 0x309   : > { %2336 = vset.pattern.permute.xlu2 %v2722_v2  ;;  %2335 = vset.pattern.permute.xlu1 %v2778_v14  ;;  %v3228_v2 = vperm.slane %v1150_v31, 0 }
 0x30b   : > { %v834_v28 = vpop.permute.xlu2 %833 }
 0x30c   : > { %vm1113_vm0 = vcmp.eq.s32.totalorder %v834_v28, %v2933_v50 }
 0x30d   : > { %v1265_v21 = vsel %vm1113_vm0, %v3228_v2, 0.0 }
 0x311   : > { %924 = vperm.xlu2 %2336, %v2876_v30   ;;  %917 = vperm.xlu1 %2335, %v2847_v24  }
 0x313   : > { %v815_v20 = vpop.permute.xlu1 %814 }
 0x314   : > { %vm1110_vm15 = vcmp.eq.s32.totalorder %v815_v20, %v2933_v50 }
 0x315   : > { %v1262_v16 = vsel %vm1110_vm15, %v3175_v19, 0.0  ;;  %vm1030_vm15 = vcmp.eq.s32.totalorder %v2955_v58, %v2933_v50 }
 0x316   : > { %1485 = vadd.xlane.f32.xlu0 %v1262_v16  ;;  %v1173_v16 = vsel %vm1021_vm7, %v2946_v54, 0.0  ;;  %vm1037_vm7 = vcmp.eq.s32.totalorder %v2977_v25, %v2933_v50 }
 0x319   : > { %2339 = vset.pattern.permute.xlu2 %v2748_v9  ;;  %2338 = vset.pattern.permute.xlu1 %v2729_v4  ;;  %v1271_v4 = vsel %vm1119_vm2, %v3228_v2, 0.0  ;;  %vm1033_vm2 = vcmp.eq.s32.totalorder %v2963_v61, %v2933_v50 }
 0x31b   : > { %v852_v24 = vpop.permute.xlu2 %851 }
 0x31c   : > { %vm1116_vm1 = vcmp.eq.s32.totalorder %v852_v24, %v2933_v50 }
 0x31d   : > { %v1268_v20 = vsel %vm1116_vm1, %v3228_v2, 0.0  ;;  %vm1031_vm1 = vcmp.eq.s32.totalorder %v2953_v57, %v2933_v50  ;;  %v1186_v57 = vsel %vm1034_vm4, %v2989_v56, 0.0 }
 0x31e   : > { %1491 = vadd.xlane.f32.xlu0 %v1265_v21  ;;  %v1170_v21 = vsel %vm1018_vm5, %v2946_v54, 0.0  ;;  %v1183_v58 = vsel %vm1031_vm1, %v2946_v54, 0.0  ;;  %vm1036_vm5 = vcmp.eq.s32.totalorder %v2971_v1, %v2933_v50  ;;  %v1189_v1 = vsel %vm1037_vm7, %v2989_v56, 0.0 }
 0x31f   : > { %vm1049_vm1 = vcmp.eq.s32.totalorder %v3022_v35, %v2933_v50 }
 0x321   : > { %942 = vperm.xlu2 %2339, %v2876_v30   ;;  %936 = vperm.xlu1 %2338, %v2876_v30  }
 0x326   : > { %1497 = vadd.xlane.f32.xlu0 %v1268_v20  ;;  %v1176_v20 = vsel %vm1024_vm10, %v2946_v54, 0.0  ;;  %vm1040_vm10 = vcmp.eq.s32.totalorder %v2985_v45, %v2933_v50 }
 0x327   : > { %v1192_v25 = vsel %vm1040_vm10, %v2989_v56, 0.0  ;;  %vm1684_vm10 = vcmask 130112  }
 0x329   : > { %2341 = vset.pattern.permute.xlu2 %v2745_v8  ;;  %2340 = vset.pattern.permute.xlu1 %v2726_v3  ;;  %v1151_v3 = vrot.slane %v2939_v52, 7 }
 0x32b   : > { %v3254_v8 = vperm.slane %v1151_v3, 0 }
 0x32d   : > { %v1281_v9 = vsel %vm1129_vm3, %v3254_v8, 0.0 }
 0x32e   : > { %1503 = vadd.xlane.f32.xlu0 %v1271_v4 }
 0x331   : > { %954 = vperm.xlu2 %2341, %v2876_v30   ;;  %948 = vperm.xlu1 %2340, %v2876_v30  }
 0x336   : > { %1523 = vadd.xlane.f32.xlu0 %v1281_v9 }
 0x339   : > { %2344 = vset.pattern.permute.xlu2 %v2826_v22  ;;  %2343 = vset.pattern.permute.xlu1 %v2757_v10  ;;  %v3261_v10 = vpop.permute.xlu1 %827  ;;  %v3273_v22 = vpop.permute.xlu2 %863 }
 0x341   : > { %972 = vperm.xlu2 %2344, %v2876_v30   ;;  %966 = vperm.xlu1 %2343, %v2876_v30   ;;  %v3275_v32 = vpop.permute.xlu2 %881 }
 0x349   : > { %2346 = vset.pattern.permute.xlu2 %v2766_v12  ;;  %2345 = vset.pattern.permute.xlu1 %v2772_v13  ;;  %v3265_v12 = vpop.permute.xlu1 %845 }
 0x351   : > { %984 = vperm.xlu2 %2346, %v2876_v30   ;;  %978 = vperm.xlu1 %2345, %v2876_v30   ;;  %v3269_v13 = vpop.permute.xlu1 %857 }
 0x359   : > { %2348 = vset.pattern.permute.xlu2 %v2834_v23  ;;  %2347 = vset.pattern.permute.xlu1 %v2784_v15  ;;  %v3271_v15 = vpop.permute.xlu1 %875 }
 0x361   : > { %1002 = vperm.xlu2 %2348, %v2876_v30   ;;  %996 = vperm.xlu1 %2347, %v2876_v30  }
 0x363   : > { %v888_v23 = vpop.permute.xlu1 %887 }
 0x364   : > { %vm1122_vm0 = vcmp.eq.s32.totalorder %v888_v23, %v2933_v50  ;;  %v1185_v23 = vsel %vm1033_vm2, %v2989_v56, 0.0  ;;  %vm1051_vm2 = vcmp.eq.s32.totalorder %v3020_v62, %v2933_v50 }
 0x369   : > { %2350 = vset.pattern.permute.xlu2 %v2778_v14  ;;  %2349 = vset.pattern.permute.xlu1 %v2799_v18  ;;  %v3279_v14 = vpop.permute.xlu2 %893 }
 0x371   : > { %1014 = vperm.xlu2 %2350, %v2876_v30   ;;  %1008 = vperm.xlu1 %2349, %v2876_v30   ;;  %v3287_v30 = vpop.permute.xlu2 %911 }
 0x373   : > { %v3277_v52 = vpop.permute.xlu1 %905 }
 0x374   : > { %vm1125_vm6 = vcmp.eq.s32.totalorder %v3277_v52, %v2933_v50 }
 0x379   : > { %v3297_v42 = vpop.permute.xlu2 %924 }
 0x381   : > { %v3307_v40 = vpop.permute.xlu2 %942 }
 0x383   : > { %v3281_v18 = vpop.permute.xlu1 %917 }
 0x384   : > { %4069 = vst [vmem:[#allocation48_spill] sm:$0xff] %v3281_v18  ;;  %v4087_v18 = vld [vmem:[#allocation37_spill] sm:$0xff] }
 0x38b   : > { %v3315_v3 = vpop.permute.xlu2 %954 }
 0x393   : > { %v3291_v31 = vpop.permute.xlu1 %936 }
 0x39a   : > { %1301 = vadd.xlane.f32.xlu2 %v1170_v21  ;;  %v1182_v21 = vsel %vm1030_vm15, %v2946_v54, 0.0  ;;  %vm1046_vm15 = vcmp.eq.s32.totalorder %v3004_v37, %v2933_v50  ;;  %v1203_v37 = vsel %vm1051_vm2, %v3040_v34, 0.0  ;;  %vm1704_vm2 = vcmask 458112  }
 0x39b   : > { %1299 = vadd.xlane.f32.xlu1 %v1169_v26  ;;  %v3325_v46 = vpop.permute.xlu2 %972  ;;  %v1180_v26 = vsel %vm1028_vm14, %v2946_v54, 0.0  ;;  %v1188_v54 = vsel %vm1036_vm5, %v2989_v56, 0.0  ;;  %vm1045_vm14 = vcmp.eq.s32.totalorder %v3006_v7, %v2933_v50 }
 0x3a2   : > { %1303 = vadd.xlane.f32.xlu2 %v1171_v38  ;;  %v1274_v38 = vsel %vm1122_vm0, %v3228_v2, 0.0  ;;  %vm1048_vm0 = vcmp.eq.s32.totalorder %v3014_v6, %v2933_v50 }
 0x3a3   : > { %1307 = vadd.xlane.f32.xlu1 %v1173_v16  ;;  %v949_v28 = vpop.permute.xlu1 %948  ;;  %v3338_v16 = vpop.xlane.xlu0 %1297  ;;  %v1200_v7 = vsel %vm1048_vm0, %v3040_v34, 0.0 }
 0x3a4   : > { %vm1132_vm8 = vcmp.eq.s32.totalorder %v949_v28, %v2933_v50 }
 0x3a5   : > { %v1284_v24 = vsel %vm1132_vm8, %v3254_v8, 0.0  ;;  %vm1039_vm8 = vcmp.eq.s32.totalorder %v2969_v0, %v2933_v50 }
 0x3a6   : > { %1529 = vadd.xlane.f32.xlu0 %v1284_v24  ;;  %v1277_v24 = vsel %vm1125_vm6, %v3228_v2, 0.0  ;;  %v1191_v52 = vsel %vm1039_vm8, %v2989_v56, 0.0 }
 0x3aa   : > { %1309 = vadd.xlane.f32.xlu2 %v1174_v41 }
 0x3ab   : > { %1313 = vadd.xlane.f32.xlu1 %v1176_v20  ;;  %v985_v51 = vpop.permute.xlu2 %984  ;;  %v3351_v61 = vpop.xlane.xlu0 %1305 }
 0x3ac   : > { %vm1138_vm3 = vcmp.eq.s32.totalorder %v985_v51, %v2933_v50 }
 0x3ad   : > { %v1290_v28 = vsel %vm1138_vm3, %v3254_v8, 0.0  ;;  %vm1052_vm3 = vcmp.eq.s32.totalorder %v3028_v5, %v2933_v50  ;;  %v4072_v5 = vld [vmem:[#allocation27_spill] sm:$0xff] }
 0x3ae   : > { %v1204_v35 = vsel %vm1052_vm3, %v3040_v34, 0.0  ;;  %vm1057_vm6 = vcmp.eq.s32.totalorder %v4072_v5, %v2933_v50  ;;  %vm1067_vm3 = vcmp.eq.s32.totalorder %v3077_v59, %v2933_v50 }
 0x3b2   : > { %1315 = vadd.xlane.f32.xlu2 %v1177_v44  ;;  %v1194_v44 = vsel %vm1042_vm11, %v2989_v56, 0.0 }
 0x3b3   : > { %v967_v4 = vpop.permute.xlu1 %966  ;;  %1319 = vadd.xlane.f32.xlu1 %v1179_v36  ;;  %v3364_v20 = vpop.xlane.xlu0 %1311 }
 0x3b4   : > { %vm1135_vm13 = vcmp.eq.s32.totalorder %v967_v4, %v2933_v50  ;;  %v1197_v4 = vsel %vm1045_vm14, %v2989_v56, 0.0 }
 0x3b5   : > { %v1287_v9 = vsel %vm1135_vm13, %v3254_v8, 0.0  ;;  %vm1043_vm13 = vcmp.eq.s32.totalorder %v2994_v60, %v2933_v50  ;;  %v1198_v60 = vsel %vm1046_vm15, %v2989_v56, 0.0  ;;  %vm1696_vm15 = vcmask 326912  }
 0x3b6   : > { %1535 = vadd.xlane.f32.xlu0 %v1287_v9  ;;  %v1195_v63 = vsel %vm1043_vm13, %v2989_v56, 0.0  ;;  %vm1692_vm13 = vcmask 261312  }
 0x3ba   : > { %1321 = vadd.xlane.f32.xlu2 %v1180_v26  ;;  %v1201_v26 = vsel %vm1049_vm1, %v3040_v34, 0.0  ;;  %vm1700_vm1 = vcmask 392512  }
 0x3bb   : > { %1325 = vadd.xlane.f32.xlu1 %v1182_v21  ;;  %v1003_v55 = vpop.permute.xlu2 %1002  ;;  %v3376_v45 = vpop.xlane.xlu0 %1317  ;;  %v4070_v21 = vld [vmem:[#allocation25_spill] sm:$0xff] }
 0x3bc   : > { %vm1141_vm9 = vcmp.eq.s32.totalorder %v1003_v55, %v2933_v50  ;;  %vm1054_vm4 = vcmp.eq.s32.totalorder %v4070_v21, %v2933_v50 }
 0x3bd   : > { %v1293_v41 = vsel %vm1141_vm9, %v3254_v8, 0.0  ;;  %v1206_v62 = vsel %vm1054_vm4, %v3040_v34, 0.0  ;;  %vm1708_vm4 = vcmask 523712  }
 0x3be   : > { %1509 = vadd.xlane.f32.xlu0 %v1274_v38  ;;  %v4071_v38 = vld [vmem:[#allocation24_spill] sm:$0xff] }
 0x3bf   : > { %vm1055_vm5 = vcmp.eq.s32.totalorder %v4071_v38, %v2933_v50 }
 0x3c2   : > { %1327 = vadd.xlane.f32.xlu2 %v1183_v58 }
 0x3c3   : > { %1331 = vadd.xlane.f32.xlu1 %v1185_v23  ;;  %v3385_v9 = vpop.xlane.xlu0 %1323  ;;  %v3398_v56 = vpop.permute.xlu1 %978  ;;  %v1207_v23 = vsel %vm1055_vm5, %v3040_v34, 0.0 }
 0x3c6   : > { %1541 = vadd.xlane.f32.xlu0 %v1290_v28  ;;  %v1209_v28 = vsel %vm1057_vm6, %v3040_v34, 0.0  ;;  %vm4022_vm6 = vcmask 589312  }
 0x3ca   : > { %1333 = vadd.xlane.f32.xlu2 %v1186_v57  ;;  %v4073_v57 = vld [vmem:[#allocation26_spill] sm:$0xff] }
 0x3cb   : > { %1337 = vadd.xlane.f32.xlu1 %v1188_v54  ;;  %v1015_v0 = vpop.permute.xlu2 %1014  ;;  %v3394_v6 = vpop.xlane.xlu0 %1329  ;;  %vm1058_vm7 = vcmp.eq.s32.totalorder %v4073_v57, %v2933_v50  ;;  %v4079_v57 = vld [vmem:[#allocation14_spill] sm:$0xff] }
 0x3cc   : > { %vm1143_vm12 = vcmp.eq.s32.totalorder %v1015_v0, %v2933_v50  ;;  %vm1064_vm14 = vcmp.eq.s32.totalorder %v4079_v57, %v2933_v50  ;;  %v4081_v57 = vld [vmem:[#allocation15_spill] sm:$0xff] }
 0x3cd   : > { %v1295_v36 = vsel %vm1143_vm12, %v3254_v8, 0.0  ;;  %vm1688_vm12 = vcmask 195712   ;;  %vm1069_vm5 = vcmp.eq.s32.totalorder %v4081_v57, %v2933_v50 }
 0x3ce   : > { %1515 = vadd.xlane.f32.xlu0 %v1277_v24  ;;  %v4075_v24 = vld [vmem:[#allocation30_spill] sm:$0xff] }
 0x3cf   : > { %vm1060_vm8 = vcmp.eq.s32.totalorder %v4075_v24, %v2933_v50 }
 0x3d2   : > { %1339 = vadd.xlane.f32.xlu2 %v1189_v1  ;;  %v1210_v1 = vsel %vm1058_vm7, %v3040_v34, 0.0  ;;  %vm4021_vm7 = vcmask 654912  }
 0x3d3   : > { %1343 = vadd.xlane.f32.xlu1 %v1191_v52  ;;  %v3406_v51 = vpop.xlane.xlu0 %1335  ;;  %v3408_v58 = vpop.permute.xlu1 %996  ;;  %v1212_v52 = vsel %vm1060_vm8, %v3040_v34, 0.0 }
 0x3d6   : > { %1547 = vadd.xlane.f32.xlu0 %v1293_v41  ;;  %v4076_v41 = vld [vmem:[#allocation21_spill] sm:$0xff] }
 0x3d7   : > { %v3425_v0 = vadd.s32 4294967288, %v4076_v41  ;;  %v3445_v5 = vadd.s32 4294967264, %v4076_v41 }
 0x3da   : > { %1345 = vadd.xlane.f32.xlu2 %v1192_v25 }
 0x3db   : > { %1349 = vadd.xlane.f32.xlu1 %v1194_v44  ;;  %v3420_v55 = vpop.xlane.xlu0 %1341  ;;  %v4077_v44 = vld [vmem:[#allocation29_spill] sm:$0xff] }
 0x3dc   : > { %vm1061_vm9 = vcmp.eq.s32.totalorder %v4077_v44, %v2933_v50 }
 0x3dd   : > { %v1213_v21 = vsel %vm1061_vm9, %v3040_v34, 0.0  ;;  %vm4019_vm9 = vcmask 720512  }
 0x3de   : > { %1551 = vadd.xlane.f32.xlu0 %v1295_v36  ;;  %v3430_v36 = vadd.s32 4294967280, %v4076_v41 }
 0x3e2   : > { %1351 = vadd.xlane.f32.xlu2 %v1195_v63 }
 0x3e3   : > { %1355 = vadd.xlane.f32.xlu1 %v1197_v4  ;;  %v3416_v54 = vpop.permute.xlu1 %1008  ;;  %v4078_v4 = vld [vmem:[#allocation31_spill] sm:$0xff] }
 0x3e4   : > { %4074 = vst [vmem:[#allocation25_spill] sm:$0xff] %v3416_v54  ;;  %vm1063_vm11 = vcmp.eq.s32.totalorder %v4078_v4, %v2933_v50  ;;  %v1216_v4 = vsel %vm1064_vm14, %v3081_v47, 0.0  ;;  %vm4018_vm14 = vcmask 786112  }
 0x3ea   : > { %1357 = vadd.xlane.f32.xlu2 %v1198_v60  ;;  %v1681_v60 = vperm.slane %v3338_v16, %v4076_v41  ;;  %v3448_v16 = vadd.s32 4294967272, %v4076_v41 }
 0x3eb   : > { %1361 = vadd.xlane.f32.xlu1 %v1200_v7 }
 0x3f2   : > { %1363 = vadd.xlane.f32.xlu2 %v1201_v26 }
 0x3f3   : > { %1367 = vadd.xlane.f32.xlu1 %v1203_v37 }
 0x3fa   : > { %1369 = vadd.xlane.f32.xlu2 %v1204_v35  ;;  %v3440_v35 = vpop.xlane.xlu0 %1347 }
 0x3fb   : > { %1373 = vadd.xlane.f32.xlu1 %v1206_v62  ;;  %v1215_v62 = vsel %vm1063_vm11, %v3040_v34, 0.0  ;;  %vm1072_vm11 = vcmp.eq.s32.totalorder %v3094_v43, %v2933_v50  ;;  %v3515_v43 = vadd.s32 4294967200, %v4076_v41 }
 0x402   : > { %1375 = vadd.xlane.f32.xlu2 %v1207_v23  ;;  %v3451_v23 = vadd.s32 4294967256, %v4076_v41 }
 0x403   : > { %1379 = vadd.xlane.f32.xlu1 %v1209_v28 }
 0x40a   : > { %1381 = vadd.xlane.f32.xlu2 %v1210_v1  ;;  %v4080_v1 = vld [vmem:[#allocation32_spill] sm:$0xff] }
 0x40b   : > { %1385 = vadd.xlane.f32.xlu1 %v1212_v52  ;;  %vm1066_vm0 = vcmp.eq.s32.totalorder %v4080_v1, %v2933_v50  ;;  %v1695_v52 = vperm.slane %v3351_v61, %v3445_v5  ;;  %v3470_v61 = vadd.s32 4294967248, %v4076_v41 }
 0x40d   : > { %v1302_v25 = vpop.xlane.xlu2 %1301 }
 0x40e   : > { %v1300_v63 = vpop.xlane.xlu1 %1299  ;;  %v1687_v26 = vperm.slane %v1302_v25, %v3430_v36 }
 0x40f   : > { %v1683_v7 = vperm.slane %v1300_v63, %v3425_v0 }
 0x411   : > { %v1685_v37 = vsel %vm1684_vm10, %v1683_v7, %v1681_v60  ;;  %v1218_v7 = vsel %vm1066_vm0, %v3081_v47, 0.0  ;;  %vm1728_vm0 = vcmask 851712  }
 0x412   : > { %1387 = vadd.xlane.f32.xlu2 %v1213_v21  ;;  %v1689_v38 = vsel %vm1688_vm12, %v1687_v26, %v1685_v37  ;;  %v3467_v26 = vadd.s32 4294967240, %v4076_v41  ;;  %v3472_v37 = vpop.xlane.xlu0 %1353  ;;  %v3475_v21 = vadd.s32 4294967232, %v4076_v41 }
 0x413   : > { %1391 = vadd.xlane.f32.xlu1 %v1215_v62 }
 0x415   : > { %v1304_v28 = vpop.xlane.xlu2 %1303 }
 0x416   : > { %v1691_v24 = vperm.slane %v1304_v28, %v3448_v16  ;;  %v1308_v34 = vpop.xlane.xlu1 %1307 }
 0x417   : > { %v1699_v25 = vperm.slane %v1308_v34, %v3451_v23 }
 0x418   : > { %v1693_v44 = vsel %vm1692_vm13, %v1691_v24, %v1689_v38  ;;  %v1707_v24 = vperm.slane %v3364_v20, %v3467_v26  ;;  %v3494_v20 = vadd.s32 4294967224, %v4076_v41 }
 0x419   : > { %v1697_v63 = vsel %vm1696_vm15, %v1695_v52, %v1693_v44  ;;  %v1221_v44 = vsel %vm1069_vm5, %v3081_v47, 0.0  ;;  %vm1732_vm5 = vcmask 917312  }
 0x41a   : > { %v1701_v60 = vsel %vm1700_vm1, %v1699_v25, %v1697_v63  ;;  %1393 = vadd.xlane.f32.xlu2 %v1216_v4  ;;  %v1219_v25 = vsel %vm1067_vm3, %v3081_v47, 0.0  ;;  %v3491_v63 = vadd.s32 4294967216, %v4076_v41  ;;  %v3497_v4 = vadd.s32 4294967208, %v4076_v41 }
 0x41b   : > { %1397 = vadd.xlane.f32.xlu1 %v1218_v7  ;;  %v4082_v7 = vld [vmem:[#allocation33_spill] sm:$0xff]  ;;  %vm1073_vm3 = vcmp.eq.s32.totalorder %v3092_v27, %v2933_v50 }
 0x41c   : > { %vm1070_vm8 = vcmp.eq.s32.totalorder %v4082_v7, %v2933_v50  ;;  %v1719_v57 = vperm.slane %v3376_v45, %v3491_v63  ;;  %v3518_v45 = vadd.s32 4294967192, %v4076_v41  ;;  %v1225_v27 = vsel %vm1073_vm3, %v3081_v47, 0.0 }
 0x41d   : > { %v1310_v62 = vpop.xlane.xlu2 %1309 }
 0x41e   : > { %v1703_v38 = vperm.slane %v1310_v62, %v3470_v61  ;;  %v1314_v28 = vpop.xlane.xlu1 %1313  ;;  %v3501_v62 = vpop.xlane.xlu0 %1359 }
 0x41f   : > { %v1711_v34 = vperm.slane %v1314_v28, %v3475_v21 }
 0x420   : > { %v1705_v1 = vsel %vm1704_vm2, %v1703_v38, %v1701_v60 }
 0x421   : > { %v1709_v52 = vsel %vm1708_vm4, %v1707_v24, %v1705_v1 }
 0x422   : > { %v1713_v59 = vsel %vm4022_vm6, %v1711_v34, %v1709_v52  ;;  %1399 = vadd.xlane.f32.xlu2 %v1219_v25  ;;  %v1222_v52 = vsel %vm1070_vm8, %v3081_v47, 0.0 }
 0x423   : > { %1403 = vadd.xlane.f32.xlu1 %v1221_v44  ;;  %v1224_v44 = vsel %vm1072_vm11, %v3081_v47, 0.0  ;;  %vm1736_vm11 = vcmask 982912  }
 0x425   : > { %v1316_v60 = vpop.xlane.xlu2 %1315 }
 0x426   : > { %v1715_v38 = vperm.slane %v1316_v60, %v3494_v20  ;;  %v1320_v28 = vpop.xlane.xlu1 %1319  ;;  %v3521_v60 = vadd.s32 4294967184, %v4076_v41 }
 0x427   : > { %v1723_v24 = vperm.slane %v1320_v28, %v3497_v4  ;;  %v4083_v28 = vld [vmem:[#allocation35_spill] sm:$0xff] }
 0x428   : > { %v1717_v34 = vsel %vm4021_vm7, %v1715_v38, %v1713_v59  ;;  %vm1075_vm8 = vcmp.eq.s32.totalorder %v4083_v28, %v2933_v50  ;;  %v3539_v28 = vadd.s32 4294967176, %v4076_v41 }
 0x429   : > { %v1721_v1 = vsel %vm4019_vm9, %v1719_v57, %v1717_v34  ;;  %v1731_v57 = vperm.slane %v3385_v9, %v3518_v45  ;;  %v3531_v34 = vpop.xlane.xlu0 %1365 }
 0x42a   : > { %v1725_v25 = vsel %vm4018_vm14, %v1723_v24, %v1721_v1  ;;  %1405 = vadd.xlane.f32.xlu2 %v1222_v52  ;;  %vm4020_vm14 = vcmask 1048512  }
 0x42b   : > { %1409 = vadd.xlane.f32.xlu1 %v1224_v44 }
 0x42d   : > { %v1322_v59 = vpop.xlane.xlu2 %1321 }
 0x42e   : > { %v1727_v7 = vperm.slane %v1322_v59, %v3515_v43  ;;  %v1326_v38 = vpop.xlane.xlu1 %1325  ;;  %v1227_v59 = vsel %vm1075_vm8, %v3081_v47, 0.0 }
 0x42f   : > { %v1735_v24 = vperm.slane %v1326_v38, %v3521_v60  ;;  %v4084_v38 = vld [vmem:[#allocation34_spill] sm:$0xff] }
 0x430   : > { %v1729_v1 = vsel %vm1728_vm0, %v1727_v7, %v1725_v25  ;;  %vm1076_vm9 = vcmp.eq.s32.totalorder %v4084_v38, %v2933_v50 }
 0x431   : > { %v1733_v52 = vsel %vm1732_vm5, %v1731_v57, %v1729_v1  ;;  %v4085_v57 = vld [vmem:[#allocation36_spill] sm:$0xff]  ;;  %v3554_v54 = vpop.xlane.xlu0 %1371 }
 0x432   : > { %v1737_v44 = vsel %vm1736_vm11, %v1735_v24, %v1733_v52  ;;  %1411 = vadd.xlane.f32.xlu2 %v1225_v27  ;;  %vm1078_vm3 = vcmp.eq.s32.totalorder %v4085_v57, %v2933_v50  ;;  %v1742_v24 = vperm.slane %v3394_v6, %v4076_v41  ;;  %v4086_v57 = vld [vmem:[#allocation16_spill] sm:$0xff] }
 0x433   : > { %1415 = vadd.xlane.f32.xlu1 %v1227_v59  ;;  %v1228_v59 = vsel %vm1076_vm9, %v3081_v47, 0.0  ;;  %vm1079_vm8 = vcmp.eq.s32.totalorder %v4086_v57, %v2933_v50  ;;  %vm1082_vm9 = vcmp.eq.s32.totalorder %v4087_v18, %v2933_v50 }
 0x435   : > { %v1328_v9 = vpop.xlane.xlu2 %1327 }
 0x436   : > { %v1739_v25 = vperm.slane %v1328_v9, %v3539_v28  ;;  %v1332_v7 = vpop.xlane.xlu1 %1331  ;;  %v1230_v9 = vsel %vm1078_vm3, %v3081_v47, 0.0 }
 0x437   : > { %v1743_v1 = vperm.slane %v1332_v7, %v3425_v0 }
 0x438   : > { %v3550_v52 = vsel %vm4020_vm14, %v1739_v25, %v1737_v44  ;;  %vm1081_vm14 = vcmp.eq.s32.totalorder %v3115_v29, %v2933_v50  ;;  %v1747_v44 = vperm.slane %v3406_v51, %v3448_v16 }
 0x439   : > { %v1744_v27 = vsel %vm1684_vm10, %v1743_v1, %v1742_v24  ;;  %v3570_v57 = vpop.xlane.xlu0 %1377 }
 0x43a   : > { %1417 = vadd.xlane.f32.xlu2 %v1228_v59  ;;  %v1231_v59 = vsel %vm1079_vm8, %v3081_v47, 0.0  ;;  %v1753_v47 = vperm.slane %v3420_v55, %v3470_v61 }
 0x43b   : > { %1421 = vadd.xlane.f32.xlu1 %v1230_v9 }
 0x43d   : > { %v1334_v38 = vpop.xlane.xlu2 %1333 }
 0x43e   : > { %v1745_v6 = vperm.slane %v1334_v38, %v3430_v36  ;;  %v1338_v7 = vpop.xlane.xlu1 %1337  ;;  %v1233_v38 = vsel %vm1081_vm14, %v3119_v17, 0.0 }
 0x43f   : > { %v1749_v25 = vperm.slane %v1338_v7, %v3445_v5 }
 0x440   : > { %v1746_v24 = vsel %vm1688_vm12, %v1745_v6, %v1744_v27  ;;  %v4088_v27 = vld [vmem:[#allocation17_spill] sm:$0xff] }
 0x441   : > { %v1748_v1 = vsel %vm1692_vm13, %v1747_v44, %v1746_v24  ;;  %vm1084_vm3 = vcmp.eq.s32.totalorder %v4088_v27, %v2933_v50  ;;  %v1234_v24 = vsel %vm1082_vm9, %v3119_v17, 0.0  ;;  %vm4091_vm9 = vcmask 720512  }
 0x442   : > { %v1750_v9 = vsel %vm1696_vm15, %v1749_v25, %v1748_v1  ;;  %1423 = vadd.xlane.f32.xlu2 %v1231_v59  ;;  %v1236_v18 = vsel %vm1084_vm3, %v3119_v17, 0.0 }
 0x443   : > { %1427 = vadd.xlane.f32.xlu1 %v1233_v38  ;;  %v4089_v38 = vld [vmem:[#allocation38_spill] sm:$0xff] }
 0x444   : > { %vm1085_vm14 = vcmp.eq.s32.totalorder %v4089_v38, %v2933_v50 }
 0x445   : > { %v1340_v29 = vpop.xlane.xlu2 %1339 }
 0x446   : > { %v1751_v51 = vperm.slane %v1340_v29, %v3451_v23  ;;  %v1344_v7 = vpop.xlane.xlu1 %1343  ;;  %v3587_v29 = vpop.xlane.xlu0 %1383 }
 0x447   : > { %v1755_v6 = vperm.slane %v1344_v7, %v3467_v26 }
 0x448   : > { %v1752_v44 = vsel %vm1700_vm1, %v1751_v51, %v1750_v9  ;;  %v1759_v9 = vperm.slane %v3440_v35, %v3494_v20  ;;  %v4090_v51 = vld [vmem:[#allocation39_spill] sm:$0xff]  ;;  %v4092_v35 = vld [vmem:[#allocation40_spill] sm:$0xff] }
 0x449   : > { %v1754_v25 = vsel %vm1704_vm2, %v1753_v47, %v1752_v44  ;;  %vm1087_vm8 = vcmp.eq.s32.totalorder %v4090_v51, %v2933_v50  ;;  %v1237_v44 = vsel %vm1085_vm14, %v3119_v17, 0.0  ;;  %vm1088_vm3 = vcmp.eq.s32.totalorder %v4092_v35, %v2933_v50 }
 0x44a   : > { %v1756_v1 = vsel %vm1708_vm4, %v1755_v6, %v1754_v25  ;;  %1429 = vadd.xlane.f32.xlu2 %v1234_v24  ;;  %v1239_v24 = vsel %vm1087_vm8, %v3119_v17, 0.0  ;;  %vm4093_vm14 = vcmask 786112  }
 0x44b   : > { %1433 = vadd.xlane.f32.xlu1 %v1236_v18 }
 0x44d   : > { %v1346_v59 = vpop.xlane.xlu2 %1345 }
 0x44e   : > { %v1757_v55 = vperm.slane %v1346_v59, %v3475_v21  ;;  %v1350_v7 = vpop.xlane.xlu1 %1349 }
 0x44f   : > { %v1761_v27 = vperm.slane %v1350_v7, %v3491_v63  ;;  %v3608_v7 = vpop.xlane.xlu0 %1389 }
 0x450   : > { %v1758_v47 = vsel %vm4022_vm6, %v1757_v55, %v1756_v1  ;;  %v1765_v1 = vperm.slane %v3472_v37, %v3515_v43 }
 0x451   : > { %v1760_v6 = vsel %vm4021_vm7, %v1759_v9, %v1758_v47  ;;  %vm1090_vm7 = vcmp.eq.s32.totalorder %v3153_v33, %v2933_v50 }
 0x452   : > { %v1762_v25 = vsel %vm4091_vm9, %v1761_v27, %v1760_v6  ;;  %1435 = vadd.xlane.f32.xlu2 %v1237_v44  ;;  %v1240_v27 = vsel %vm1088_vm3, %v3119_v17, 0.0  ;;  %v1242_v6 = vsel %vm1090_vm7, %v3119_v17, 0.0  ;;  %v4094_v44 = vld [vmem:[#allocation41_spill] sm:$0xff]  ;;  %vm1959_vm3 = vcmask 1041409  }
 0x453   : > { %1439 = vadd.xlane.f32.xlu1 %v1239_v24  ;;  %vm1091_vm8 = vcmp.eq.s32.totalorder %v4094_v44, %v2933_v50  ;;  %v4098_v44 = vld [vmem:[#allocation43_spill] sm:$0xff] }
 0x455   : > { %v1352_v18 = vpop.xlane.xlu2 %1351 }
 0x456   : > { %v1763_v59 = vperm.slane %v1352_v18, %v3497_v4  ;;  %v1356_v38 = vpop.xlane.xlu1 %1355  ;;  %v4095_v18 = vld [vmem:[#allocation42_spill] sm:$0xff] }
 0x457   : > { %v1767_v55 = vperm.slane %v1356_v38, %v3518_v45  ;;  %vm1093_vm9 = vcmp.eq.s32.totalorder %v4095_v18, %v2933_v50  ;;  %v1243_v38 = vsel %vm1091_vm8, %v3119_v17, 0.0  ;;  %vm1096_vm8 = vcmp.eq.s32.totalorder %v4098_v44, %v2933_v50 }
 0x458   : > { %v1764_v9 = vsel %vm4093_vm14, %v1763_v59, %v1762_v25  ;;  %v1771_v25 = vperm.slane %v3501_v62, %v3539_v28  ;;  %vm4096_vm14 = vcmask 1048512  }
 0x459   : > { %v1766_v51 = vsel %vm1728_vm0, %v1765_v1, %v1764_v9  ;;  %v3625_v1 = vpop.xlane.xlu0 %1395 }
 0x45a   : > { %v1768_v47 = vsel %vm1732_vm5, %v1767_v55, %v1766_v51  ;;  %1441 = vadd.xlane.f32.xlu2 %v1240_v27  ;;  %v1245_v55 = vsel %vm1093_vm9, %v3119_v17, 0.0  ;;  %v4097_v51 = vld [vmem:[#allocation18_spill] sm:$0xff]  ;;  %vm1097_vm9 = vcmp.eq.s32.totalorder %v3193_v11, %v2933_v50 }
 0x45b   : > { %1445 = vadd.xlane.f32.xlu1 %v1242_v6  ;;  %vm1094_vm7 = vcmp.eq.s32.totalorder %v4097_v51, %v2933_v50 }
 0x45c   : > { %v1246_v18 = vsel %vm1094_vm7, %v3119_v17, 0.0  ;;  %v1782_v17 = vperm.slane %v3554_v54, %v3451_v23  ;;  %vm1102_vm7 = vcmp.eq.s32.totalorder %v3201_v39, %v2933_v50 }
 0x45d   : > { %v1358_v37 = vpop.xlane.xlu2 %1357 }
 0x45e   : > { %v1769_v33 = vperm.slane %v1358_v37, %v3521_v60  ;;  %v1362_v24 = vpop.xlane.xlu1 %1361  ;;  %v1776_v37 = vperm.slane %v3531_v34, %v3430_v36 }
 0x45f   : > { %v1773_v27 = vperm.slane %v1362_v24, %v4076_v41  ;;  %v1248_v24 = vsel %vm1096_vm8, %v3175_v19, 0.0  ;;  %vm4100_vm8 = vcmask 654912  }
 0x460   : > { %v1770_v35 = vsel %vm1736_vm11, %v1769_v33, %v1768_v47 }
 0x461   : > { %v1772_v59 = vsel %vm4096_vm14, %v1771_v25, %v1770_v35  ;;  %vm1100_vm14 = vcmp.eq.s32.totalorder %v3197_v49, %v2933_v50  ;;  %v1254_v49 = vsel %vm1102_vm7, %v3175_v19, 0.0  ;;  %vm4104_vm7 = vcmask 786112  }
 0x462   : > { %1447 = vadd.xlane.f32.xlu2 %v1243_v38  ;;  %v3629_v9 = vsel %vm1959_vm3, %v1772_v59, %v3550_v52  ;;  %v3645_v59 = vpop.xlane.xlu0 %1401 }
 0x463   : > { %1451 = vadd.xlane.f32.xlu1 %v1245_v55 }
 0x465   : > { %v1364_v62 = vpop.xlane.xlu2 %1363 }
 0x466   : > { %v1774_v47 = vperm.slane %v1364_v62, %v3425_v0  ;;  %v1368_v6 = vpop.xlane.xlu1 %1367  ;;  %v4099_v62 = vld [vmem:[#allocation19_spill] sm:$0xff] }
 0x467   : > { %v1778_v33 = vperm.slane %v1368_v6, %v3448_v16  ;;  %vm1099_vm3 = vcmp.eq.s32.totalorder %v4099_v62, %v2933_v50  ;;  %v1249_v6 = vsel %vm1097_vm9, %v3175_v19, 0.0 }
 0x468   : > { %v1775_v52 = vsel %vm1684_vm10, %v1774_v47, %v1773_v27  ;;  %v1251_v11 = vsel %vm1099_vm3, %v3175_v19, 0.0 }
 0x469   : > { %v1777_v25 = vsel %vm1688_vm12, %v1776_v37, %v1775_v52 }
 0x46a   : > { %v1779_v35 = vsel %vm1692_vm13, %v1778_v33, %v1777_v25  ;;  %1453 = vadd.xlane.f32.xlu2 %v1246_v18  ;;  %v3660_v33 = vpop.xlane.xlu0 %1407  ;;  %v1788_v25 = vperm.slane %v3570_v57, %v3475_v21  ;;  %v4101_v57 = vld [vmem:[#allocation44_spill] sm:$0xff] }
 0x46b   : > { %1457 = vadd.xlane.f32.xlu1 %v1248_v24  ;;  %vm1103_vm9 = vcmp.eq.s32.totalorder %v4101_v57, %v2933_v50 }
 0x46d   : > { %v1370_v34 = vpop.xlane.xlu2 %1369 }
 0x46e   : > { %v1780_v38 = vperm.slane %v1370_v34, %v3445_v5  ;;  %v1374_v55 = vpop.xlane.xlu1 %1373  ;;  %v1252_v34 = vsel %vm1100_vm14, %v3175_v19, 0.0  ;;  %vm4103_vm14 = vcmask 720512  }
 0x46f   : > { %v1784_v51 = vperm.slane %v1374_v55, %v3470_v61 }
 0x470   : > { %v1781_v27 = vsel %vm1696_vm15, %v1780_v38, %v1779_v35 }
 0x471   : > { %v1783_v47 = vsel %vm1700_vm1, %v1782_v17, %v1781_v27  ;;  %v1794_v17 = vperm.slane %v3587_v29, %v3497_v4 }
 0x472   : > { %v1785_v37 = vsel %vm1704_vm2, %v1784_v51, %v1783_v47  ;;  %1459 = vadd.xlane.f32.xlu2 %v1249_v6  ;;  %v4102_v51 = vld [vmem:[#allocation45_spill] sm:$0xff]  ;;  %v3683_v47 = vpop.xlane.xlu0 %1413 }
 0x473   : > { %1463 = vadd.xlane.f32.xlu1 %v1251_v11  ;;  %vm1105_vm3 = vcmp.eq.s32.totalorder %v4102_v51, %v2933_v50  ;;  %v1255_v11 = vsel %vm1103_vm9, %v3175_v19, 0.0  ;;  %vm1961_vm9 = vcmask 1042434  }
 0x475   : > { %v1376_v44 = vpop.xlane.xlu2 %1375 }
 0x476   : > { %v1786_v54 = vperm.slane %v1376_v44, %v3467_v26  ;;  %v1380_v52 = vpop.xlane.xlu1 %1379 }
 0x477   : > { %v1790_v18 = vperm.slane %v1380_v52, %v3494_v20  ;;  %v4105_v52 = vld [vmem:[#allocation46_spill] sm:$0xff] }
 0x478   : > { %v1787_v35 = vsel %vm1708_vm4, %v1786_v54, %v1785_v37  ;;  %v1257_v54 = vsel %vm1105_vm3, %v3175_v19, 0.0  ;;  %vm4106_vm3 = vcmask 1048512  }
 0x479   : > { %v1789_v24 = vsel %vm4022_vm6, %v1788_v25, %v1787_v35  ;;  %v1800_v35 = vperm.slane %v3608_v7, %v3521_v60 }
 0x47a   : > { %v1791_v38 = vsel %vm4100_vm8, %v1790_v18, %v1789_v24  ;;  %1465 = vadd.xlane.f32.xlu2 %v1252_v34  ;;  %vm1106_vm8 = vcmp.eq.s32.totalorder %v4105_v52, %v2933_v50 }
 0x47b   : > { %1469 = vadd.xlane.f32.xlu1 %v1254_v49  ;;  %v1258_v49 = vsel %vm1106_vm8, %v3175_v19, 0.0 }
 0x47d   : > { %v1382_v55 = vpop.xlane.xlu2 %1381 }
 0x47e   : > { %v1792_v39 = vperm.slane %v1382_v55, %v3491_v63  ;;  %v1386_v62 = vpop.xlane.xlu1 %1385  ;;  %v3701_v55 = vpop.xlane.xlu0 %1419 }
 0x47f   : > { %v1796_v27 = vperm.slane %v1386_v62, %v3515_v43  ;;  %v4107_v62 = vld [vmem:[#allocation20_spill] sm:$0xff] }
 0x480   : > { %v1793_v6 = vsel %vm4103_vm14, %v1792_v39, %v1791_v38  ;;  %vm1108_vm14 = vcmp.eq.s32.totalorder %v3215_v48, %v2933_v50 }
 0x481   : > { %v1795_v37 = vsel %vm4104_vm7, %v1794_v17, %v1793_v6  ;;  %v1260_v39 = vsel %vm1108_vm14, %v3175_v19, 0.0  ;;  %vm1109_vm7 = vcmp.eq.s32.totalorder %v4107_v62, %v2933_v50  ;;  %v1805_v17 = vperm.slane %v3625_v1, %v3425_v0  ;;  %v4108_v6 = vld [vmem:[#allocation47_spill] sm:$0xff] }
 0x482   : > { %v1797_v44 = vsel %vm1728_vm0, %v1796_v27, %v1795_v37  ;;  %1471 = vadd.xlane.f32.xlu2 %v1255_v11  ;;  %vm1111_vm8 = vcmp.eq.s32.totalorder %v4108_v6, %v2933_v50  ;;  %vm1112_vm14 = vcmp.eq.s32.totalorder %v3261_v10, %v2933_v50  ;;  %v1817_v62 = vperm.slane %v3660_v33, %v3467_v26 }
 0x483   : > { %1475 = vadd.xlane.f32.xlu1 %v1257_v54  ;;  %v1263_v54 = vsel %vm1111_vm8, %v3175_v19, 0.0  ;;  %vm1118_vm8 = vcmp.eq.s32.totalorder %v3273_v22, %v2933_v50 }
 0x485   : > { %v1388_v29 = vpop.xlane.xlu2 %1387 }
 0x486   : > { %v1798_v25 = vperm.slane %v1388_v29, %v3518_v45  ;;  %v1392_v18 = vpop.xlane.xlu1 %1391  ;;  %v3720_v29 = vpop.xlane.xlu0 %1425 }
 0x487   : > { %v1802_v24 = vperm.slane %v1392_v18, %v3539_v28  ;;  %v4109_v18 = vld [vmem:[#allocation22_spill] sm:$0xff] }
 0x488   : > { %v1799_v34 = vsel %vm1732_vm5, %v1798_v25, %v1797_v44  ;;  %v1261_v44 = vsel %vm1109_vm7, %v3175_v19, 0.0  ;;  %vm1117_vm7 = vcmp.eq.s32.totalorder %v3269_v13, %v2933_v50 }
 0x489   : > { %v1801_v38 = vsel %vm1736_vm11, %v1800_v35, %v1799_v34  ;;  %v1811_v35 = vperm.slane %v3645_v59, %v3445_v5 }
 0x48a   : > { %v1803_v57 = vsel %vm4106_vm3, %v1802_v24, %v1801_v38  ;;  %1477 = vadd.xlane.f32.xlu2 %v1258_v49  ;;  %v1264_v38 = vsel %vm1112_vm14, %v3228_v2, 0.0  ;;  %vm1115_vm3 = vcmp.eq.s32.totalorder %v3265_v12, %v2933_v50  ;;  %v1269_v12 = vsel %vm1117_vm7, %v3228_v2, 0.0 }
 0x48b   : > { %v3706_v7 = vsel %vm1961_vm9, %v1803_v57, %v3629_v9  ;;  %1481 = vadd.xlane.f32.xlu1 %v1260_v39  ;;  %vm1114_vm9 = vcmp.eq.s32.totalorder %v4109_v18, %v2933_v50  ;;  %v1267_v6 = vsel %vm1115_vm3, %v3228_v2, 0.0  ;;  %vm1120_vm14 = vcmp.eq.s32.totalorder %v3271_v15, %v2933_v50 }
 0x48c   : > { %v1266_v10 = vsel %vm1114_vm9, %v3228_v2, 0.0  ;;  %vm4110_vm9 = vcmask 654912   ;;  %vm4111_vm3 = vcmask 720512   ;;  %vm4112_vm7 = vcmask 786112  }
 0x48d   : > { %v1394_v48 = vpop.xlane.xlu2 %1393  ;;  %v1272_v18 = vsel %vm1120_vm14, %v3228_v2, 0.0  ;;  %vm1963_vm14 = vcmask 1043459  }
 0x48e   : > { %v1804_v51 = vperm.slane %v1394_v48, %v4076_v41  ;;  %v1398_v27 = vpop.xlane.xlu1 %1397  ;;  %v3735_v39 = vpop.xlane.xlu0 %1431 }
 0x48f   : > { %v1807_v37 = vperm.slane %v1398_v27, %v3430_v36 }
 0x490   : > { %v1806_v11 = vsel %vm1684_vm10, %v1805_v17, %v1804_v51 }
 0x491   : > { %v1808_v9 = vsel %vm1688_vm12, %v1807_v37, %v1806_v11 }
 0x492   : > { %1483 = vadd.xlane.f32.xlu2 %v1261_v44 }
 0x493   : > { %1487 = vadd.xlane.f32.xlu1 %v1263_v54 }
 0x495   : > { %v1400_v1 = vpop.xlane.xlu2 %1399 }
 0x496   : > { %v1809_v52 = vperm.slane %v1400_v1, %v3448_v16  ;;  %v1404_v25 = vpop.xlane.xlu1 %1403  ;;  %v3758_v54 = vpop.xlane.xlu0 %1437 }
 0x497   : > { %v1813_v24 = vperm.slane %v1404_v25, %v3451_v23  ;;  %v1270_v25 = vsel %vm1118_vm8, %v3228_v2, 0.0  ;;  %vm1131_vm8 = vcmp.eq.s32.totalorder %v3307_v40, %v2933_v50 }
 0x498   : > { %v1810_v19 = vsel %vm1692_vm13, %v1809_v52, %v1808_v9  ;;  %v1823_v9 = vperm.slane %v3683_v47, %v3491_v63 }
 0x499   : > { %v1812_v34 = vsel %vm1696_vm15, %v1811_v35, %v1810_v19 }
 0x49a   : > { %v1814_v49 = vsel %vm1700_vm1, %v1813_v24, %v1812_v34  ;;  %1489 = vadd.xlane.f32.xlu2 %v1264_v38  ;;  %v1829_v24 = vperm.slane %v3701_v55, %v3518_v45 }
 0x49b   : > { %1493 = vadd.xlane.f32.xlu1 %v1266_v10 }
 0x49d   : > { %v1406_v57 = vpop.xlane.xlu2 %1405 }
 0x49e   : > { %v1815_v59 = vperm.slane %v1406_v57, %v3470_v61  ;;  %v1410_v48 = vpop.xlane.xlu1 %1409  ;;  %v3773_v34 = vpop.xlane.xlu0 %1443 }
 0x49f   : > { %v1819_v17 = vperm.slane %v1410_v48, %v3475_v21  ;;  %v1835_v48 = vperm.slane %v3720_v29, %v4076_v41 }
 0x4a0   : > { %v1816_v51 = vsel %vm1704_vm2, %v1815_v59, %v1814_v49 }
 0x4a1   : > { %v1818_v27 = vsel %vm1708_vm4, %v1817_v62, %v1816_v51  ;;  %v1283_v51 = vsel %vm1131_vm8, %v3254_v8, 0.0  ;;  %vm1136_vm8 = vcmp.eq.s32.totalorder %v3325_v46, %v2933_v50 }
 0x4a2   : > { %v1820_v37 = vsel %vm4022_vm6, %v1819_v17, %v1818_v27  ;;  %1495 = vadd.xlane.f32.xlu2 %v1267_v6  ;;  %vm1128_vm6 = vcmp.eq.s32.totalorder %v3297_v42, %v2933_v50 }
 0x4a3   : > { %1499 = vadd.xlane.f32.xlu1 %v1269_v12  ;;  %v1280_v10 = vsel %vm1128_vm6, %v3254_v8, 0.0  ;;  %vm1133_vm6 = vcmp.eq.s32.totalorder %v3315_v3, %v2933_v50  ;;  %v4114_v12 = vld [vmem:[#allocation28_spill] sm:$0xff] }
 0x4a5   : > { %v1412_v11 = vpop.xlane.xlu2 %1411 }
 0x4a6   : > { %v1821_v13 = vperm.slane %v1412_v11, %v3494_v20  ;;  %v1416_v33 = vpop.xlane.xlu1 %1415  ;;  %v1450_v6 = vpop.xlane.xlu0 %1449 }
 0x4a7   : > { %v1825_v44 = vperm.slane %v1416_v33, %v3497_v4 }
 0x4a8   : > { %v1822_v1 = vsel %vm4110_vm9, %v1821_v13, %v1820_v37  ;;  %vm1130_vm9 = vcmp.eq.s32.totalorder %v3291_v31, %v2933_v50  ;;  %v1285_v37 = vsel %vm1133_vm6, %v3254_v8, 0.0  ;;  %v1840_v13 = vperm.slane %v3735_v39, %v3448_v16 }
 0x4a9   : > { %v1824_v52 = vsel %vm4111_vm3, %v1823_v9, %v1822_v1  ;;  %v1282_v42 = vsel %vm1130_vm9, %v3254_v8, 0.0  ;;  %vm4113_vm3 = vcmask 1048512   ;;  %vm1121_vm9 = vcmp.eq.s32.totalorder %v3275_v32, %v2933_v50 }
 0x4aa   : > { %v1826_v22 = vsel %vm4112_vm7, %v1825_v44, %v1824_v52  ;;  %1501 = vadd.xlane.f32.xlu2 %v1270_v25  ;;  %vm1134_vm7 = vcmp.eq.s32.totalorder %v4114_v12, %v2933_v50  ;;  %v1273_v52 = vsel %vm1121_vm9, %v3228_v2, 0.0  ;;  %vm1123_vm6 = vcmp.eq.s32.totalorder %v3279_v14, %v2933_v50 }
 0x4ab   : > { %1505 = vadd.xlane.f32.xlu1 %v1272_v18  ;;  %v1286_v9 = vsel %vm1134_vm7, %v3254_v8, 0.0  ;;  %v1846_v18 = vperm.slane %v3758_v54, %v3470_v61  ;;  %vm4116_vm7 = vcmask 589312   ;;  %vm4117_vm9 = vcmask 654912  }
 0x4ad   : > { %v1418_v47 = vpop.xlane.xlu2 %1417 }
 0x4ae   : > { %v1827_v15 = vperm.slane %v1418_v47, %v3515_v43  ;;  %v1422_v35 = vpop.xlane.xlu1 %1421  ;;  %v1456_v25 = vpop.xlane.xlu0 %1455 }
 0x4af   : > { %v1831_v19 = vperm.slane %v1422_v35, %v3521_v60  ;;  %v1288_v35 = vsel %vm1136_vm8, %v3254_v8, 0.0  ;;  %vm4118_vm8 = vcmask 720512  }
 0x4b0   : > { %v1828_v38 = vsel %vm1728_vm0, %v1827_v15, %v1826_v22 }
 0x4b1   : > { %v1830_v49 = vsel %vm1732_vm5, %v1829_v24, %v1828_v38 }
 0x4b2   : > { %v1832_v57 = vsel %vm1736_vm11, %v1831_v19, %v1830_v49  ;;  %1521 = vadd.xlane.f32.xlu2 %v1280_v10  ;;  %v4115_v10 = vld [vmem:[#allocation23_spill] sm:$0xff] }
 0x4b3   : > { %1525 = vadd.xlane.f32.xlu1 %v1282_v42  ;;  %v1852_v42 = vperm.slane %v3773_v34, %v3494_v20 }
 0x4b5   : > { %v1424_v55 = vpop.xlane.xlu2 %1423 }
 0x4b6   : > { %v1833_v31 = vperm.slane %v1424_v55, %v3539_v28  ;;  %v1428_v59 = vpop.xlane.xlu1 %1427  ;;  %v1462_v49 = vpop.xlane.xlu0 %1461 }
 0x4b7   : > { %v1836_v62 = vperm.slane %v1428_v59, %v3425_v0  ;;  %v1275_v59 = vsel %vm1123_vm6, %v3228_v2, 0.0  ;;  %vm4119_vm6 = vcmask 786112  }
 0x4b8   : > { %v1834_v17 = vsel %vm4113_vm3, %v1833_v31, %v1832_v57  ;;  %vm1124_vm3 = vcmp.eq.s32.totalorder %v4115_v10, %v2933_v50 }
 0x4b9   : > { %v3791_v27 = vsel %vm1963_vm14, %v1834_v17, %v3706_v7  ;;  %v1837_v40 = vsel %vm1684_vm10, %v1836_v62, %v1835_v48  ;;  %vm1137_vm14 = vcmp.eq.s32.totalorder %v3398_v56, %v2933_v50  ;;  %v1276_v14 = vsel %vm1124_vm3, %v3228_v2, 0.0 }
 0x4ba   : > { %1527 = vadd.xlane.f32.xlu2 %v1283_v51  ;;  %v1289_v19 = vsel %vm1137_vm14, %v3254_v8, 0.0  ;;  %vm1139_vm14 = vcmp.eq.s32.totalorder %v3327_v53, %v2933_v50  ;;  %v1858_v51 = vperm.slane %v1450_v6, %v3515_v43  ;;  %vm1126_vm3 = vcmp.eq.s32.totalorder %v3287_v30, %v2933_v50 }
 0x4bb   : > { %1531 = vadd.xlane.f32.xlu1 %v1285_v37  ;;  %v1291_v12 = vsel %vm1139_vm14, %v3254_v8, 0.0  ;;  %vm4121_vm14 = vcmask 1048512  }
 0x4bd   : > { %v1430_v29 = vpop.xlane.xlu2 %1429 }
 0x4be   : > { %v1838_v3 = vperm.slane %v1430_v29, %v3430_v36  ;;  %v1434_v11 = vpop.xlane.xlu1 %1433  ;;  %v1468_v37 = vpop.xlane.xlu0 %1467 }
 0x4bf   : > { %v1842_v7 = vperm.slane %v1434_v11, %v3445_v5 }
 0x4c0   : > { %v1839_v33 = vsel %vm1688_vm12, %v1838_v3, %v1837_v40 }
 0x4c1   : > { %v1841_v44 = vsel %vm1692_vm13, %v1840_v13, %v1839_v33  ;;  %v4120_v33 = vld [vmem:[#allocation48_spill] sm:$0xff] }
 0x4c2   : > { %v1843_v1 = vsel %vm1696_vm15, %v1842_v7, %v1841_v44  ;;  %1533 = vadd.xlane.f32.xlu2 %v1286_v9  ;;  %v1864_v7 = vperm.slane %v1456_v25, %v3539_v28  ;;  %v4122_v25 = vld [vmem:[#allocation25_spill] sm:$0xff] }
 0x4c3   : > { %1507 = vadd.xlane.f32.xlu1 %v1273_v52  ;;  %v1278_v52 = vsel %vm1126_vm3, %v3228_v2, 0.0  ;;  %vm4124_vm3 = vcmask 654912  }
 0x4c5   : > { %v1436_v22 = vpop.xlane.xlu2 %1435 }
 0x4c6   : > { %v1844_v32 = vperm.slane %v1436_v22, %v3451_v23  ;;  %v1440_v39 = vpop.xlane.xlu1 %1439  ;;  %v1474_v9 = vpop.xlane.xlu0 %1473 }
 0x4c7   : > { %v1848_v47 = vperm.slane %v1440_v39, %v3467_v26 }
 0x4c8   : > { %v1845_v15 = vsel %vm1700_vm1, %v1844_v32, %v1843_v1 }
 0x4c9   : > { %v1847_v24 = vsel %vm1704_vm2, %v1846_v18, %v1845_v15  ;;  %v1869_v15 = vperm.slane %v1462_v49, %v3430_v36 }
 0x4ca   : > { %v1849_v46 = vsel %vm1708_vm4, %v1848_v47, %v1847_v24  ;;  %1537 = vadd.xlane.f32.xlu2 %v1288_v35 }
 0x4cb   : > { %1539 = vadd.xlane.f32.xlu1 %v1289_v19 }
 0x4cd   : > { %v1442_v38 = vpop.xlane.xlu2 %1441 }
 0x4ce   : > { %v1850_v56 = vperm.slane %v1442_v38, %v3475_v21  ;;  %v1446_v54 = vpop.xlane.xlu1 %1445  ;;  %v1480_v19 = vpop.xlane.xlu0 %1479 }
 0x4cf   : > { %v1854_v57 = vperm.slane %v1446_v54, %v3491_v63  ;;  %v1875_v54 = vperm.slane %v1468_v37, %v3451_v23 }
 0x4d0   : > { %v1851_v55 = vsel %vm4116_vm7, %v1850_v56, %v1849_v46  ;;  %vm1140_vm7 = vcmp.eq.s32.totalorder %v3408_v58, %v2933_v50 }
 0x4d1   : > { %v1853_v31 = vsel %vm4117_vm9, %v1852_v42, %v1851_v55  ;;  %v1292_v11 = vsel %vm1140_vm7, %v3254_v8, 0.0  ;;  %vm1127_vm9 = vcmp.eq.s32.totalorder %v4120_v33, %v2933_v50  ;;  %vm1142_vm7 = vcmp.eq.s32.totalorder %v4122_v25, %v2933_v50 }
 0x4d2   : > { %v1855_v48 = vsel %vm4118_vm8, %v1854_v57, %v1853_v31  ;;  %1511 = vadd.xlane.f32.xlu2 %v1275_v59  ;;  %vm1965_vm8 = vcmask 1044484   ;;  %v1279_v22 = vsel %vm1127_vm9, %v3228_v2, 0.0  ;;  %v1294_v2 = vsel %vm1142_vm7, %v3254_v8, 0.0 }
 0x4d3   : > { %1513 = vadd.xlane.f32.xlu1 %v1276_v14  ;;  %vm4125_vm9 = vcmask 720512   ;;  %vm4127_vm7 = vcmask 1048512  }
 0x4d5   : > { %v1448_v62 = vpop.xlane.xlu2 %1447 }
 0x4d6   : > { %v1856_v34 = vperm.slane %v1448_v62, %v3497_v4  ;;  %v1452_v17 = vpop.xlane.xlu1 %1451  ;;  %v1486_v57 = vpop.xlane.xlu0 %1485 }
 0x4d7   : > { %v1860_v40 = vperm.slane %v1452_v17, %v3518_v45  ;;  %v1893_v33 = vperm.slane %v1486_v57, %v3521_v60 }
 0x4d8   : > { %v1857_v29 = vsel %vm4119_vm6, %v1856_v34, %v1855_v48  ;;  %v1881_v48 = vperm.slane %v1474_v9, %v3475_v21  ;;  %vm4123_vm6 = vcmask 589312  }
 0x4d9   : > { %v1859_v3 = vsel %vm1728_vm0, %v1858_v51, %v1857_v29 }
 0x4da   : > { %v1861_v53 = vsel %vm1732_vm5, %v1860_v40, %v1859_v3  ;;  %1543 = vadd.xlane.f32.xlu2 %v1291_v12  ;;  %v1887_v12 = vperm.slane %v1480_v19, %v3497_v4 }
 0x4db   : > { %1545 = vadd.xlane.f32.xlu1 %v1292_v11 }
 0x4dd   : > { %v1454_v13 = vpop.xlane.xlu2 %1453 }
 0x4de   : > { %v1862_v58 = vperm.slane %v1454_v13, %v3521_v60  ;;  %v1458_v6 = vpop.xlane.xlu1 %1457  ;;  %v1492_v40 = vpop.xlane.xlu0 %1491 }
 0x4df   : > { %v1866_v39 = vperm.slane %v1458_v6, %v4076_v41 }
 0x4e0   : > { %v1863_v44 = vsel %vm1736_vm11, %v1862_v58, %v1861_v53 }
 0x4e1   : > { %v1865_v1 = vsel %vm4121_vm14, %v1864_v7, %v1863_v44  ;;  %vm1967_vm14 = vcmask 1045509  }
 0x4e2   : > { %1517 = vadd.xlane.f32.xlu2 %v1278_v52  ;;  %v1966_v30 = vsel %vm1965_vm8, %v1865_v1, %v3791_v27  ;;  %vm4126_vm8 = vcmask 786112  }
 0x4e3   : > { %1519 = vadd.xlane.f32.xlu1 %v1279_v22 }
 0x4e5   : > { %v1460_v32 = vpop.xlane.xlu2 %1459 }
 0x4e6   : > { %v1867_v18 = vperm.slane %v1460_v32, %v3425_v0  ;;  %v1464_v47 = vpop.xlane.xlu1 %1463  ;;  %v1498_v44 = vpop.xlane.xlu0 %1497 }
 0x4e7   : > { %v1871_v35 = vperm.slane %v1464_v47, %v3448_v16 }
 0x4e8   : > { %v1868_v24 = vsel %vm1684_vm10, %v1867_v18, %v1866_v39  ;;  %v1898_v39 = vperm.slane %v1492_v40, %v3425_v0 }
 0x4e9   : > { %v1870_v27 = vsel %vm1688_vm12, %v1869_v15, %v1868_v24 }
 0x4ea   : > { %v1872_v46 = vsel %vm1692_vm13, %v1871_v35, %v1870_v27  ;;  %1549 = vadd.xlane.f32.xlu2 %v1294_v2 }
 0x4ed   : > { %v1466_v50 = vpop.xlane.xlu2 %1465 }
 0x4ee   : > { %v1873_v38 = vperm.slane %v1466_v50, %v3445_v5  ;;  %v1470_v56 = vpop.xlane.xlu1 %1469  ;;  %v1504_v15 = vpop.xlane.xlu0 %1503 }
 0x4ef   : > { %v1877_v49 = vperm.slane %v1470_v56, %v3470_v61 }
 0x4f0   : > { %v1874_v10 = vsel %vm1696_vm15, %v1873_v38, %v1872_v46 }
 0x4f1   : > { %v1876_v42 = vsel %vm1700_vm1, %v1875_v54, %v1874_v10 }
 0x4f2   : > { %v1878_v8 = vsel %vm1704_vm2, %v1877_v49, %v1876_v42 }
 0x4f5   : > { %v1472_v55 = vpop.xlane.xlu2 %1471 }
 0x4f6   : > { %v1879_v31 = vperm.slane %v1472_v55, %v3467_v26  ;;  %v1476_v59 = vpop.xlane.xlu1 %1475  ;;  %v1524_v27 = vpop.xlane.xlu0 %1523 }
 0x4f7   : > { %v1883_v14 = vperm.slane %v1476_v59, %v3494_v20 }
 0x4f8   : > { %v1880_v62 = vsel %vm1708_vm4, %v1879_v31, %v1878_v8 }
 0x4f9   : > { %v1882_v34 = vsel %vm4123_vm6, %v1881_v48, %v1880_v62 }
 0x4fa   : > { %v1884_v17 = vsel %vm4124_vm3, %v1883_v14, %v1882_v34 }
 0x4fd   : > { %v1478_v51 = vpop.xlane.xlu2 %1477 }
 0x4fe   : > { %v1885_v37 = vperm.slane %v1478_v51, %v3491_v63  ;;  %v1482_v29 = vpop.xlane.xlu1 %1481  ;;  %v1530_v50 = vpop.xlane.xlu0 %1529  ;;  %v1929_v51 = vperm.slane %v1524_v27, %v3425_v0 }
 0x4ff   : > { %v1889_v3 = vperm.slane %v1482_v29, %v3515_v43 }
 0x500   : > { %v1886_v11 = vsel %vm4125_vm9, %v1885_v37, %v1884_v17  ;;  %v1904_v17 = vperm.slane %v1498_v44, %v3445_v5 }
 0x501   : > { %v1888_v53 = vsel %vm4126_vm8, %v1887_v12, %v1886_v11 }
 0x502   : > { %v1890_v13 = vsel %vm1728_vm0, %v1889_v3, %v1888_v53 }
 0x505   : > { %v1484_v58 = vpop.xlane.xlu2 %1483 }
 0x506   : > { %v1891_v6 = vperm.slane %v1484_v58, %v3518_v45  ;;  %v1488_v7 = vpop.xlane.xlu1 %1487  ;;  %v1536_v54 = vpop.xlane.xlu0 %1535 }
 0x507   : > { %v1895_v9 = vperm.slane %v1488_v7, %v3539_v28 }
 0x508   : > { %v1892_v1 = vsel %vm1732_vm5, %v1891_v6, %v1890_v13  ;;  %v1910_v6 = vperm.slane %v1504_v15, %v3467_v26 }
 0x509   : > { %v1894_v52 = vsel %vm1736_vm11, %v1893_v33, %v1892_v1  ;;  %v1935_v33 = vperm.slane %v1530_v50, %v3445_v5 }
 0x50a   : > { %v1896_v22 = vsel %vm4127_vm7, %v1895_v9, %v1894_v52 }
 0x50b   : > { %v3891_v32 = vsel %vm1967_vm14, %v1896_v22, %v1966_v30 }
 0x50d   : > { %v1490_v25 = vpop.xlane.xlu2 %1489 }
 0x50e   : > { %v1897_v18 = vperm.slane %v1490_v25, %v4076_v41  ;;  %v1494_v47 = vpop.xlane.xlu1 %1493  ;;  %v1510_v10 = vpop.xlane.xlu0 %1509 }
 0x50f   : > { %v1900_v57 = vperm.slane %v1494_v47, %v3430_v36  ;;  %v1916_v15 = vperm.slane %v1510_v10, %v3491_v63 }
 0x510   : > { %v1899_v35 = vsel %vm1684_vm10, %v1898_v39, %v1897_v18 }
 0x511   : > { %v1901_v48 = vsel %vm1688_vm12, %v1900_v57, %v1899_v35 }
 0x515   : > { %v1496_v24 = vpop.xlane.xlu2 %1495 }
 0x516   : > { %v1500_v2 = vpop.xlane.xlu1 %1499  ;;  %v1902_v55 = vperm.slane %v1496_v24, %v3448_v16  ;;  %v1542_v59 = vpop.xlane.xlu0 %1541 }
 0x517   : > { %v1906_v40 = vperm.slane %v1500_v2, %v3451_v23  ;;  %v1941_v2 = vperm.slane %v1536_v54, %v3467_v26  ;;  %v1947_v10 = vperm.slane %v1542_v59, %v3491_v63 }
 0x518   : > { %v1903_v62 = vsel %vm1692_vm13, %v1902_v55, %v1901_v48 }
 0x519   : > { %v1905_v37 = vsel %vm1696_vm15, %v1904_v17, %v1903_v62 }
 0x51a   : > { %v1907_v53 = vsel %vm1700_vm1, %v1906_v40, %v1905_v37  ;;  %v1296_v40 = vld [vmem:[#allocation2] sm:$0xff] }
 0x51d   : > { %v1502_v19 = vpop.xlane.xlu2 %1501 }
 0x51e   : > { %v1506_v46 = vpop.xlane.xlu1 %1505  ;;  %v1908_v29 = vperm.slane %v1502_v19, %v3470_v61  ;;  %v1516_v9 = vpop.xlane.xlu0 %1515 }
 0x525   : > { %v1522_v38 = vpop.xlane.xlu2 %1521 }
 0x526   : > { %v1526_v56 = vpop.xlane.xlu1 %1525  ;;  %v1928_v34 = vperm.slane %v1522_v38, %v4076_v41  ;;  %v1909_v41 = vsel %vm1704_vm2, %v1908_v29, %v1907_v53  ;;  %v1548_v38 = vpop.xlane.xlu0 %1547 }
 0x527   : > { %v1931_v12 = vperm.slane %v1526_v56, %v3430_v36  ;;  %v1912_v36 = vperm.slane %v1506_v46, %v3475_v21  ;;  %v1911_v44 = vsel %vm1708_vm4, %v1910_v6, %v1909_v41 }
 0x528   : > { %v1930_v3 = vsel %vm1684_vm10, %v1929_v51, %v1928_v34  ;;  %vm4128_vm10 = vmmov %vm4123_vm6  ;;  %v1953_v34 = vperm.slane %v1548_v38, %v3518_v45 }
 0x529   : > { %v1932_v58 = vsel %vm1688_vm12, %v1931_v12, %v1930_v3  ;;  %v1913_v25 = vsel %vm4128_vm10, %v1912_v36, %v1911_v44  ;;  %vm4129_vm12 = vmmov %vm4124_vm3 }
 0x52d   : > { %v1528_v30 = vpop.xlane.xlu2 %1527 }
 0x52e   : > { %v1532_v49 = vpop.xlane.xlu1 %1531  ;;  %v1933_v11 = vperm.slane %v1528_v30, %v3448_v16  ;;  %v1552_v59 = vpop.xlane.xlu0 %1551 }
 0x52f   : > { %v1937_v16 = vperm.slane %v1532_v49, %v3451_v23 }
 0x530   : > { %v1934_v7 = vsel %vm1692_vm13, %v1933_v11, %v1932_v58  ;;  %vm4130_vm13 = vmmov %vm4125_vm9 }
 0x531   : > { %v1936_v52 = vsel %vm1696_vm15, %v1935_v33, %v1934_v7  ;;  %vm4131_vm15 = vmmov %vm4126_vm8 }
 0x532   : > { %v1938_v39 = vsel %vm1700_vm1, %v1937_v16, %v1936_v52  ;;  %vm4132_vm1 = vmmov %vm4123_vm6 }
 0x533   : > { %vm4134_vm6 = vmmov %vm4125_vm9 }
 0x534   : > { %vm4136_vm9 = vmmov %vm4127_vm7 }
 0x535   : > { %v1534_v42 = vpop.xlane.xlu2 %1533 }
 0x536   : > { %v1508_v8 = vpop.xlane.xlu1 %1507  ;;  %v1939_v22 = vperm.slane %v1534_v42, %v3470_v61 }
 0x537   : > { %v1914_v1 = vperm.slane %v1508_v8, %v3494_v20 }
 0x538   : > { %v1940_v35 = vsel %vm1704_vm2, %v1939_v22, %v1938_v39  ;;  %vm4133_vm2 = vmmov %vm4124_vm3 }
 0x539   : > { %v1915_v18 = vsel %vm4129_vm12, %v1914_v1, %v1913_v25  ;;  %v1942_v19 = vsel %vm1708_vm4, %v1941_v2, %v1940_v35  ;;  %vm1969_vm4 = vcmask 1046534   ;;  %vm4135_vm3 = vmmov %vm4126_vm8  ;;  %vm1971_vm8 = vcmask 1047559  }
 0x53a   : > { %v1917_v61 = vsel %vm4130_vm13, %v1916_v15, %v1915_v18 }
 0x53d   : > { %v1538_v31 = vpop.xlane.xlu2 %1537 }
 0x53e   : > { %v1540_v14 = vpop.xlane.xlu1 %1539  ;;  %v1943_v23 = vperm.slane %v1538_v31, %v3475_v21  ;;  %v1922_v21 = vperm.slane %v1516_v9, %v3518_v45 }
 0x53f   : > { %v1945_v46 = vperm.slane %v1540_v14, %v3494_v20 }
 0x540   : > { %v1944_v56 = vsel %vm4132_vm1, %v1943_v23, %v1942_v19 }
 0x541   : > { %v1946_v26 = vsel %vm4133_vm2, %v1945_v46, %v1944_v56 }
 0x542   : > { %v1948_v55 = vsel %vm4134_vm6, %v1947_v10, %v1946_v26 }
 0x545   : > { %v1512_v13 = vpop.xlane.xlu2 %1511 }
 0x546   : > { %v1514_v0 = vpop.xlane.xlu1 %1513  ;;  %v1918_v5 = vperm.slane %v1512_v13, %v3497_v4 }
 0x547   : > { %v1920_v27 = vperm.slane %v1514_v0, %v3515_v43 }
 0x548   : > { %v1919_v50 = vsel %vm4131_vm15, %v1918_v5, %v1917_v61 }
 0x549   : > { %v1921_v30 = vsel %vm1728_vm0, %v1920_v27, %v1919_v50 }
 0x54a   : > { %v1923_v8 = vsel %vm1732_vm5, %v1922_v21, %v1921_v30 }
 0x54d   : > { %v1544_v47 = vpop.xlane.xlu2 %1543 }
 0x54e   : > { %v1546_v24 = vpop.xlane.xlu1 %1545  ;;  %v1949_v54 = vperm.slane %v1544_v47, %v3497_v4 }
 0x54f   : > { %v1951_v31 = vperm.slane %v1546_v24, %v3515_v43  ;;  %v1957_v43 = vperm.slane %v1552_v59, %v3539_v28 }
 0x550   : > { %v1950_v14 = vsel %vm4135_vm3, %v1949_v54, %v1948_v55 }
 0x551   : > { %v1952_v62 = vsel %vm1728_vm0, %v1951_v31, %v1950_v14  ;;  %vm4137_vm0 = vmmov %vm4127_vm7 }
 0x555   : > { %v1518_v49 = vpop.xlane.xlu2 %1517 }
 0x556   : > { %v1924_v42 = vperm.slane %v1518_v49, %v3521_v60  ;;  %v1520_v20 = vpop.xlane.xlu1 %1519 }
 0x557   : > { %v1926_v57 = vperm.slane %v1520_v20, %v3539_v28 }
 0x558   : > { %v1925_v48 = vsel %vm1736_vm11, %v1924_v42, %v1923_v8 }
 0x559   : > { %v1927_v4 = vsel %vm4136_vm9, %v1926_v57, %v1925_v48 }
 0x55a   : > { %v1970_v63 = vsel %vm1969_vm4, %v1927_v4, %v3891_v32  ;;  %v1954_v32 = vsel %vm1732_vm5, %v1953_v34, %v1952_v62 }
 0x55d   : > { %v1550_v17 = vpop.xlane.xlu2 %1549 }
 0x55e   : > { %v1955_v51 = vperm.slane %v1550_v17, %v3521_v60 }
 0x560   : > { %v1956_v37 = vsel %vm1736_vm11, %v1955_v51, %v1954_v32 }
 0x561   : > { %v1958_v45 = vsel %vm4137_vm0, %v1957_v43, %v1956_v37 }
 0x562   : > { %v1972_v29 = vsel %vm1971_vm8, %v1958_v45, %v1970_v63 }
 0x563   : > { %v1974_v60 = vadd.f32 %v1972_v29, %v1296_v40 }
 0x565   : > { %1975 = vst [vmem:[#allocation2] sm:$0xff] %v1974_v60 }
 0x566   : > { %1977 = vst [vmem:[%s2718_s22] sm:$0xff] %v1974_v60 }
 0x567   : > { %2439 = shalt.err (!%p2436_p4)
}
 0x568   : > { %2129 = dma.vmem_to_hbm [thread:$0]  (%p2682_p11), %s1993_s16, 128, %s1995_s26, %s1979_s6  }
 0x569 PF: > { %p2143_p5 = scmp.ge.s32.totalorder %s2538_s19, 2  ;;  %s2006_s28 = sand.u32 1, %s2498_s9  }
 0x56a   : > { %s2007_s22 = scalar_lea.sflag [#allocation5], %s2006_s28 }
 0x56b   : > { %p2139_p10 = pnand %p2143_p5, %p2686_p12 }
 0x56d   : > { %p2140_p9 = pneg %p2139_p10 }
 0x56f   : > { %2493 = dma.done.wait (%p2140_p9), %s2007_s22, 128  }
 0x570   : > { %2495 = vsyncadd (%p2140_p9), %s2007_s22, 4294967168  ;;  %s21_s19 = sadd.s32 1, %s2538_s19   ;;  %s4138_s8 = sld [smem:[#allocation12_spill]] }
 0x571   : > { %p18_p6 = scmp.ge.s32.totalorder %s21_s19, 34   ;;  %s4139_s27 = sld [smem:[#allocation13_spill]] }
 0x572   : > { %s4140_s9 = smov %s2502_s10  ;;  %s4141_s10 = smov %s2506_s11 }
 0x573   : > { %s4142_s11 = smov %s2668_s25  ;;  %s4143_s12 = smov %s2514_s13 }
 0x574   : > { %s4144_s13 = smov %s2518_s14  ;;  %s4145_s14 = smov %s2647_s4 }
 0x575   : > { %s4146_s15 = smov %s2530_s17  ;;  %s4147_s16 = smov %s2534_s18 }
 0x576   : > { %s4148_s17 = smov %s4138_s8  ;;  %20 = sbr.rel (!%p18_p6) target bundleno = 13 (0xd), region = 90 }
 0x577   : > { %s4149_s18 = smov %s4139_s27 }
 0x57b   :  { %2013 = vsyncpa [#allocation4], 1 }
 0x57c   :  { %2015 = vsyncpa [#allocation4 + $0x1], 1 }
 0x57d   :  { %2016 = vsyncpa [#allocation7], 1 }
 0x57e   :  { %2018 = vsyncpa [#allocation7 + $0x1], 1 }
 0x57f   :  { %2019 = vsyncpa [#allocation5], 1 }
 0x580   :  { %2021 = vsyncpa [#allocation5 + $0x1], 1 }

</bundles_post_ra>
